<compile_context>
chip_gen: v5e
topology: v5e:2x2
jax: 0.10.0
libtpu: 0.0.40
codegen_flags: <defaults>
</compile_context>

<pallas_src>
import jax
import jax.numpy as jnp
from jax import lax
from jax.experimental import pallas as pl
from jax.experimental.pallas import tpu as pltpu


def _lstm_step_from_gates(gates, c, H):
    """gates: (B, 4H) f32 pre-activation in PyTorch order [i, f, g, o]; c: (B, H) f32."""
    sig = jax.nn.sigmoid(gates)     # full-vreg activation (EUP), slice afterwards
    th = jnp.tanh(gates)
    i = sig[:, 0 * H:1 * H]
    f = sig[:, 1 * H:2 * H]
    g = th[:, 2 * H:3 * H]
    o = sig[:, 3 * H:4 * H]
    c_new = f * c + i * g
    h_new = o * jnp.tanh(c_new)
    return h_new, c_new


def seq2seq_kernel(x_ref, wih1_ref, whh1_ref, b1_ref,
                   wih2_ref, whh2_ref, b2_ref, y_ref):
    T_in, TB, D_in = x_ref.shape
    H4 = whh1_ref.shape[1]
    H = H4 // 4
    T_out = y_ref.shape[1] // H

    wih1 = wih1_ref[...]          # (D_in, 4H) bf16
    whh1 = whh1_ref[...]          # (H, 4H)    bf16
    wih2 = wih2_ref[...]          # (H, 4H)    bf16
    whh2 = whh2_ref[...]          # (H, 4H)    bf16
    b1 = b1_ref[...]              # (1, 4H)    f32
    b2 = b2_ref[...]              # (1, 4H)    f32

    # ---------------- Encoder ----------------
    # Input projections are independent of h -> off the serial chain.  Leading
    # dim indexing (no sublane-merging reshape); one small bf16 matmul per t.
    xproj = [jnp.dot(x_ref[t], wih1, preferred_element_type=jnp.float32) + b1
             for t in range(T_in)]

    h = jnp.zeros((TB, H), jnp.float32)   # PyTorch default zero initial state
    c = jnp.zeros((TB, H), jnp.float32)

    # Static unroll: T_in is small and static; (h, c) stay in vregs.  The only
    # per-step serial work is cast(h) -> single-pass bf16 MXU dot -> gate math.
    for t in range(T_in):
        gates = xproj[t] + jnp.dot(h.astype(jnp.bfloat16), whh1,
                                   preferred_element_type=jnp.float32)
        h, c = _lstm_step_from_gates(gates, c, H)

    # ---------------- Decoder ----------------
    # Decoder input z = final encoder output (constant over time): hoist
    # z @ Wih2 + b2 out of the loop.  Initial state = encoder final (h, c).
    const_gates = jnp.dot(h.astype(jnp.bfloat16), wih2,
                          preferred_element_type=jnp.float32) + b2

    outs = []
    for t in range(T_out):
        gates = const_gates + jnp.dot(h.astype(jnp.bfloat16), whh2,
                                      preferred_element_type=jnp.float32)
        h, c = _lstm_step_from_gates(gates, c, H)
        outs.append(h)

    # Single lane-dense store: (TILE_B, T_out*H); wrapper reshapes to (B, T_out, H).
    y_ref[...] = jnp.concatenate(outs, axis=1).astype(y_ref.dtype)


def seq2seq_pallas(x, params, output_shape):
    """x: (B, T_in, D_in) batch-first float32. Returns (B, T_out, H) float32."""
    B, T_in, D_in = x.shape
    T_out, H = output_shape

    wih1, whh1, bih1, bhh1, wih2, whh2, bih2, bhh2 = params
    # bf16 weights -> guaranteed single-pass MXU matmuls; f32 accumulation.
    wih1_t = jnp.transpose(wih1).astype(jnp.bfloat16)     # (D_in, 4H)
    whh1_t = jnp.transpose(whh1).astype(jnp.bfloat16)     # (H, 4H)
    wih2_t = jnp.transpose(wih2).astype(jnp.bfloat16)     # (H, 4H)
    whh2_t = jnp.transpose(whh2).astype(jnp.bfloat16)     # (H, 4H)
    b1 = (bih1 + bhh1).reshape(1, 4 * H).astype(jnp.float32)
    b2 = (bih2 + bhh2).reshape(1, 4 * H).astype(jnp.float32)

    # Layout change done in the wrapper (folds into XLA's transpose); bf16 x
    # halves the HBM->VMEM DMA bytes for the activations.
    x_tm = jnp.transpose(x, (1, 0, 2)).astype(jnp.bfloat16)   # (T_in, B, D_in)

    # Batch tiling: tiny here (grid=(1,) at B=8) but lets larger batches
    # pipeline DMA against the recurrence and use both v7x TensorCores.
    tile_b = 8 if B % 8 == 0 else B
    grid = (B // tile_b,)

    def full_spec(shape):
        return pl.BlockSpec(shape, lambda b, _s=shape: (0,) * len(_s))

    y2d = pl.pallas_call(
        seq2seq_kernel,
        out_shape=jax.ShapeDtypeStruct((B, T_out * H), jnp.float32),
        grid=grid,
        in_specs=[
            pl.BlockSpec((T_in, tile_b, D_in), lambda b: (0, b, 0)),
            full_spec((D_in, 4 * H)),
            full_spec((H, 4 * H)),
            full_spec((1, 4 * H)),
            full_spec((H, 4 * H)),
            full_spec((H, 4 * H)),
            full_spec((1, 4 * H)),
        ],
        out_specs=pl.BlockSpec((tile_b, T_out * H), lambda b: (b, 0)),
        compiler_params=pltpu.CompilerParams(
            dimension_semantics=("parallel",)),
    )(x_tm, wih1_t, whh1_t, b1, wih2_t, whh2_t, b2)

    return y2d.reshape(B, T_out, H)   # lane order within a row is t-major


# ----------------------- pure-JAX reference (for checking) -----------------------
def _lstm_ref(x, h0, c0, wih, whh, bih, bhh):
    def step(carry, x_t):
        h, c = carry
        gates = x_t @ wih.T + h @ whh.T + bih + bhh
        i, f, g, o = jnp.split(gates, 4, axis=-1)
        i = jax.nn.sigmoid(i)
        f = jax.nn.sigmoid(f)
        g = jnp.tanh(g)
        o = jax.nn.sigmoid(o)
        c = f * c + i * g
        h = o * jnp.tanh(c)
        return (h, c), h

    (hN, cN), ys = lax.scan(step, (h0, c0), jnp.swapaxes(x, 0, 1))
    return jnp.swapaxes(ys, 0, 1), hN, cN


def seq2seq_ref(x, params, output_shape):
    B = x.shape[0]
    T_out, H = output_shape
    wih1, whh1, bih1, bhh1, wih2, whh2, bih2, bhh2 = params
    h0 = jnp.zeros((B, H), jnp.float32)
    c0 = jnp.zeros((B, H), jnp.float32)
    t, hN, cN = _lstm_ref(x, h0, c0, wih1, whh1, bih1, bhh1)
    z = jnp.repeat(t[:, -1:, :], T_out, axis=1)
    y, _, _ = _lstm_ref(z, hN, cN, wih2, whh2, bih2, bhh2)
    return y


if __name__ == "__main__":
    # Small shapes consistent with Seq2SeqV2: input_shape=(T_in, D_in), output_shape=(T_out, H)
    B, T_in, D_in = 8, 8, 16
    T_out, H = 8, 32
    output_shape = (T_out, H)

    key = jax.random.PRNGKey(0)
    keys = jax.random.split(key, 9)
    bound = 1.0 / jnp.sqrt(H)  # PyTorch LSTM default init: U(-1/sqrt(H), 1/sqrt(H))

    def u(k, shape):
        return jax.random.uniform(k, shape, jnp.float32, -bound, bound)

    params = (
        u(keys[0], (4 * H, D_in)),   # seq1 weight_ih_l0
        u(keys[1], (4 * H, H)),      # seq1 weight_hh_l0
        u(keys[2], (4 * H,)),        # seq1 bias_ih_l0
        u(keys[3], (4 * H,)),        # seq1 bias_hh_l0
        u(keys[4], (4 * H, H)),      # seq2 weight_ih_l0
        u(keys[5], (4 * H, H)),      # seq2 weight_hh_l0
        u(keys[6], (4 * H,)),        # seq2 bias_ih_l0
        u(keys[7], (4 * H,)),        # seq2 bias_hh_l0
    )

    x = jax.random.normal(keys[8], (B, T_in, D_in), jnp.float32)

    y_kernel = jax.block_until_ready(seq2seq_pallas(x, params, output_shape))
    y_ref = jax.block_until_ready(seq2seq_ref(x, params, output_shape))

    assert y_kernel.shape == (B, T_out, H)
    # Tolerance loosened for bf16 MXU operands (f32 accumulation, f32 gate math).
    assert jnp.allclose(y_kernel, y_ref, atol=2e-2, rtol=2e-2), "mismatch vs reference"
    print("KERNEL_OK")
</pallas_src>

<mosaic_0001>
module attributes {stable_mosaic.version = 11 : i64} {
  func.func @seq2seq_kernel(%arg0: i32, %arg1: memref<8x8x16xbf16, #tpu.memory_space<vmem>>, %arg2: memref<16x128xbf16, #tpu.memory_space<vmem>>, %arg3: memref<32x128xbf16, #tpu.memory_space<vmem>>, %arg4: memref<1x128xf32, #tpu.memory_space<vmem>>, %arg5: memref<32x128xbf16, #tpu.memory_space<vmem>>, %arg6: memref<32x128xbf16, #tpu.memory_space<vmem>>, %arg7: memref<1x128xf32, #tpu.memory_space<vmem>>, %arg8: memref<8x256xf32, #tpu.memory_space<vmem>>) attributes {dimension_semantics = [#tpu.dimension_semantics<parallel>], iteration_bounds = array<i64: 1>, scalar_prefetch = 0 : i64, scratch_operands = 0 : i64, tpu.core_type = #tpu.core_type<tc>, window_params = [{transform_indices = @transform_0, window_bounds = array<i64: 8, 8, 16>}, {pipeline_mode = #tpu.pipeline_mode<synchronous>, transform_indices = @transform_1, window_bounds = array<i64: 16, 128>}, {pipeline_mode = #tpu.pipeline_mode<synchronous>, transform_indices = @transform_2, window_bounds = array<i64: 32, 128>}, {pipeline_mode = #tpu.pipeline_mode<synchronous>, transform_indices = @transform_3, window_bounds = array<i64: 1, 128>}, {pipeline_mode = #tpu.pipeline_mode<synchronous>, transform_indices = @transform_4, window_bounds = array<i64: 32, 128>}, {pipeline_mode = #tpu.pipeline_mode<synchronous>, transform_indices = @transform_5, window_bounds = array<i64: 32, 128>}, {pipeline_mode = #tpu.pipeline_mode<synchronous>, transform_indices = @transform_6, window_bounds = array<i64: 1, 128>}, {transform_indices = @transform_7, window_bounds = array<i64: 8, 256>}]} {
    %c0 = arith.constant 0 : index
    %c0_0 = arith.constant 0 : index
    %0 = vector.load %arg2[%c0, %c0_0] : memref<16x128xbf16, #tpu.memory_space<vmem>>, vector<16x128xbf16>
    %c0_1 = arith.constant 0 : index
    %c0_2 = arith.constant 0 : index
    %1 = vector.load %arg3[%c0_1, %c0_2] : memref<32x128xbf16, #tpu.memory_space<vmem>>, vector<32x128xbf16>
    %c0_3 = arith.constant 0 : index
    %c0_4 = arith.constant 0 : index
    %2 = vector.load %arg5[%c0_3, %c0_4] : memref<32x128xbf16, #tpu.memory_space<vmem>>, vector<32x128xbf16>
    %c0_5 = arith.constant 0 : index
    %c0_6 = arith.constant 0 : index
    %3 = vector.load %arg6[%c0_5, %c0_6] : memref<32x128xbf16, #tpu.memory_space<vmem>>, vector<32x128xbf16>
    %c0_7 = arith.constant 0 : index
    %c0_8 = arith.constant 0 : index
    %4 = vector.load %arg4[%c0_7, %c0_8] : memref<1x128xf32, #tpu.memory_space<vmem>>, vector<1x128xf32>
    %c0_9 = arith.constant 0 : index
    %c0_10 = arith.constant 0 : index
    %5 = vector.load %arg7[%c0_9, %c0_10] : memref<1x128xf32, #tpu.memory_space<vmem>>, vector<1x128xf32>
    %c0_11 = arith.constant 0 : index
    %c0_12 = arith.constant 0 : index
    %c0_13 = arith.constant 0 : index
    %6 = vector.load %arg1[%c0_11, %c0_12, %c0_13] : memref<8x8x16xbf16, #tpu.memory_space<vmem>>, vector<1x8x16xbf16>
    %7 = vector.shape_cast %6 : vector<1x8x16xbf16> to vector<8x16xbf16>
    %cst = arith.constant dense<0.000000e+00> : vector<8x128xf32>
    %8 = tpu.matmul %7, %0, %cst {dimension_numbers = #tpu.dot_dimension_numbers<[1], [0], [0], [1], [0, 0, 1, 1], [], []>} : vector<8x16xbf16>, vector<16x128xbf16>, vector<8x128xf32> -> vector<8x128xf32>
    %9 = vector.broadcast %4 : vector<1x128xf32> to vector<8x128xf32>
    %10 = arith.addf %8, %9 : vector<8x128xf32>
    %c1 = arith.constant 1 : index
    %c0_14 = arith.constant 0 : index
    %c0_15 = arith.constant 0 : index
    %11 = vector.load %arg1[%c1, %c0_14, %c0_15] : memref<8x8x16xbf16, #tpu.memory_space<vmem>>, vector<1x8x16xbf16>
    %12 = vector.shape_cast %11 : vector<1x8x16xbf16> to vector<8x16xbf16>
    %cst_16 = arith.constant dense<0.000000e+00> : vector<8x128xf32>
    %13 = tpu.matmul %12, %0, %cst_16 {dimension_numbers = #tpu.dot_dimension_numbers<[1], [0], [0], [1], [0, 0, 1, 1], [], []>} : vector<8x16xbf16>, vector<16x128xbf16>, vector<8x128xf32> -> vector<8x128xf32>
    %14 = vector.broadcast %4 : vector<1x128xf32> to vector<8x128xf32>
    %15 = arith.addf %13, %14 : vector<8x128xf32>
    %c2 = arith.constant 2 : index
    %c0_17 = arith.constant 0 : index
    %c0_18 = arith.constant 0 : index
    %16 = vector.load %arg1[%c2, %c0_17, %c0_18] : memref<8x8x16xbf16, #tpu.memory_space<vmem>>, vector<1x8x16xbf16>
    %17 = vector.shape_cast %16 : vector<1x8x16xbf16> to vector<8x16xbf16>
    %cst_19 = arith.constant dense<0.000000e+00> : vector<8x128xf32>
    %18 = tpu.matmul %17, %0, %cst_19 {dimension_numbers = #tpu.dot_dimension_numbers<[1], [0], [0], [1], [0, 0, 1, 1], [], []>} : vector<8x16xbf16>, vector<16x128xbf16>, vector<8x128xf32> -> vector<8x128xf32>
    %19 = vector.broadcast %4 : vector<1x128xf32> to vector<8x128xf32>
    %20 = arith.addf %18, %19 : vector<8x128xf32>
    %c3 = arith.constant 3 : index
    %c0_20 = arith.constant 0 : index
    %c0_21 = arith.constant 0 : index
    %21 = vector.load %arg1[%c3, %c0_20, %c0_21] : memref<8x8x16xbf16, #tpu.memory_space<vmem>>, vector<1x8x16xbf16>
    %22 = vector.shape_cast %21 : vector<1x8x16xbf16> to vector<8x16xbf16>
    %cst_22 = arith.constant dense<0.000000e+00> : vector<8x128xf32>
    %23 = tpu.matmul %22, %0, %cst_22 {dimension_numbers = #tpu.dot_dimension_numbers<[1], [0], [0], [1], [0, 0, 1, 1], [], []>} : vector<8x16xbf16>, vector<16x128xbf16>, vector<8x128xf32> -> vector<8x128xf32>
    %24 = vector.broadcast %4 : vector<1x128xf32> to vector<8x128xf32>
    %25 = arith.addf %23, %24 : vector<8x128xf32>
    %c4 = arith.constant 4 : index
    %c0_23 = arith.constant 0 : index
    %c0_24 = arith.constant 0 : index
    %26 = vector.load %arg1[%c4, %c0_23, %c0_24] : memref<8x8x16xbf16, #tpu.memory_space<vmem>>, vector<1x8x16xbf16>
    %27 = vector.shape_cast %26 : vector<1x8x16xbf16> to vector<8x16xbf16>
    %cst_25 = arith.constant dense<0.000000e+00> : vector<8x128xf32>
    %28 = tpu.matmul %27, %0, %cst_25 {dimension_numbers = #tpu.dot_dimension_numbers<[1], [0], [0], [1], [0, 0, 1, 1], [], []>} : vector<8x16xbf16>, vector<16x128xbf16>, vector<8x128xf32> -> vector<8x128xf32>
    %29 = vector.broadcast %4 : vector<1x128xf32> to vector<8x128xf32>
    %30 = arith.addf %28, %29 : vector<8x128xf32>
    %c5 = arith.constant 5 : index
    %c0_26 = arith.constant 0 : index
    %c0_27 = arith.constant 0 : index
    %31 = vector.load %arg1[%c5, %c0_26, %c0_27] : memref<8x8x16xbf16, #tpu.memory_space<vmem>>, vector<1x8x16xbf16>
    %32 = vector.shape_cast %31 : vector<1x8x16xbf16> to vector<8x16xbf16>
    %cst_28 = arith.constant dense<0.000000e+00> : vector<8x128xf32>
    %33 = tpu.matmul %32, %0, %cst_28 {dimension_numbers = #tpu.dot_dimension_numbers<[1], [0], [0], [1], [0, 0, 1, 1], [], []>} : vector<8x16xbf16>, vector<16x128xbf16>, vector<8x128xf32> -> vector<8x128xf32>
    %34 = vector.broadcast %4 : vector<1x128xf32> to vector<8x128xf32>
    %35 = arith.addf %33, %34 : vector<8x128xf32>
    %c6 = arith.constant 6 : index
    %c0_29 = arith.constant 0 : index
    %c0_30 = arith.constant 0 : index
    %36 = vector.load %arg1[%c6, %c0_29, %c0_30] : memref<8x8x16xbf16, #tpu.memory_space<vmem>>, vector<1x8x16xbf16>
    %37 = vector.shape_cast %36 : vector<1x8x16xbf16> to vector<8x16xbf16>
    %cst_31 = arith.constant dense<0.000000e+00> : vector<8x128xf32>
    %38 = tpu.matmul %37, %0, %cst_31 {dimension_numbers = #tpu.dot_dimension_numbers<[1], [0], [0], [1], [0, 0, 1, 1], [], []>} : vector<8x16xbf16>, vector<16x128xbf16>, vector<8x128xf32> -> vector<8x128xf32>
    %39 = vector.broadcast %4 : vector<1x128xf32> to vector<8x128xf32>
    %40 = arith.addf %38, %39 : vector<8x128xf32>
    %c7 = arith.constant 7 : index
    %c0_32 = arith.constant 0 : index
    %c0_33 = arith.constant 0 : index
    %41 = vector.load %arg1[%c7, %c0_32, %c0_33] : memref<8x8x16xbf16, #tpu.memory_space<vmem>>, vector<1x8x16xbf16>
    %42 = vector.shape_cast %41 : vector<1x8x16xbf16> to vector<8x16xbf16>
    %cst_34 = arith.constant dense<0.000000e+00> : vector<8x128xf32>
    %43 = tpu.matmul %42, %0, %cst_34 {dimension_numbers = #tpu.dot_dimension_numbers<[1], [0], [0], [1], [0, 0, 1, 1], [], []>} : vector<8x16xbf16>, vector<16x128xbf16>, vector<8x128xf32> -> vector<8x128xf32>
    %44 = vector.broadcast %4 : vector<1x128xf32> to vector<8x128xf32>
    %45 = arith.addf %43, %44 : vector<8x128xf32>
    %cst_35 = arith.constant 0.000000e+00 : f32
    %46 = vector.broadcast %cst_35 : f32 to vector<8x32xf32>
    %cst_36 = arith.constant 0.000000e+00 : f32
    %47 = vector.broadcast %cst_36 : f32 to vector<8x32xf32>
    %48 = arith.truncf %46 : vector<8x32xf32> to vector<8x32xbf16>
    %cst_37 = arith.constant dense<0.000000e+00> : vector<8x128xf32>
    %49 = tpu.matmul %48, %1, %cst_37 {dimension_numbers = #tpu.dot_dimension_numbers<[1], [0], [0], [1], [0, 0, 1, 1], [], []>} : vector<8x32xbf16>, vector<32x128xbf16>, vector<8x128xf32> -> vector<8x128xf32>
    %50 = arith.addf %10, %49 : vector<8x128xf32>
    %51 = arith.negf %50 : vector<8x128xf32>
    %52 = math.exp %51 : vector<8x128xf32>
    %cst_38 = arith.constant 1.000000e+00 : f32
    %53 = vector.broadcast %cst_38 : f32 to vector<8x128xf32>
    %54 = arith.addf %53, %52 : vector<8x128xf32>
    %55 = arith.divf %53, %54 : vector<8x128xf32>
    %56 = math.tanh %50 : vector<8x128xf32>
    %57 = vector.extract_strided_slice %55 {offsets = [0, 0], sizes = [8, 32], strides = [1, 1]} : vector<8x128xf32> to vector<8x32xf32>
    %58 = vector.extract_strided_slice %55 {offsets = [0, 32], sizes = [8, 32], strides = [1, 1]} : vector<8x128xf32> to vector<8x32xf32>
    %59 = vector.extract_strided_slice %56 {offsets = [0, 64], sizes = [8, 32], strides = [1, 1]} : vector<8x128xf32> to vector<8x32xf32>
    %60 = vector.extract_strided_slice %55 {offsets = [0, 96], sizes = [8, 32], strides = [1, 1]} : vector<8x128xf32> to vector<8x32xf32>
    %61 = arith.mulf %58, %47 : vector<8x32xf32>
    %62 = arith.mulf %57, %59 : vector<8x32xf32>
    %63 = arith.addf %61, %62 : vector<8x32xf32>
    %64 = math.tanh %63 : vector<8x32xf32>
    %65 = arith.mulf %60, %64 : vector<8x32xf32>
    %66 = arith.truncf %65 : vector<8x32xf32> to vector<8x32xbf16>
    %cst_39 = arith.constant dense<0.000000e+00> : vector<8x128xf32>
    %67 = tpu.matmul %66, %1, %cst_39 {dimension_numbers = #tpu.dot_dimension_numbers<[1], [0], [0], [1], [0, 0, 1, 1], [], []>} : vector<8x32xbf16>, vector<32x128xbf16>, vector<8x128xf32> -> vector<8x128xf32>
    %68 = arith.addf %15, %67 : vector<8x128xf32>
    %69 = arith.negf %68 : vector<8x128xf32>
    %70 = math.exp %69 : vector<8x128xf32>
    %cst_40 = arith.constant 1.000000e+00 : f32
    %71 = vector.broadcast %cst_40 : f32 to vector<8x128xf32>
    %72 = arith.addf %71, %70 : vector<8x128xf32>
    %73 = arith.divf %71, %72 : vector<8x128xf32>
    %74 = math.tanh %68 : vector<8x128xf32>
    %75 = vector.extract_strided_slice %73 {offsets = [0, 0], sizes = [8, 32], strides = [1, 1]} : vector<8x128xf32> to vector<8x32xf32>
    %76 = vector.extract_strided_slice %73 {offsets = [0, 32], sizes = [8, 32], strides = [1, 1]} : vector<8x128xf32> to vector<8x32xf32>
    %77 = vector.extract_strided_slice %74 {offsets = [0, 64], sizes = [8, 32], strides = [1, 1]} : vector<8x128xf32> to vector<8x32xf32>
    %78 = vector.extract_strided_slice %73 {offsets = [0, 96], sizes = [8, 32], strides = [1, 1]} : vector<8x128xf32> to vector<8x32xf32>
    %79 = arith.mulf %76, %63 : vector<8x32xf32>
    %80 = arith.mulf %75, %77 : vector<8x32xf32>
    %81 = arith.addf %79, %80 : vector<8x32xf32>
    %82 = math.tanh %81 : vector<8x32xf32>
    %83 = arith.mulf %78, %82 : vector<8x32xf32>
    %84 = arith.truncf %83 : vector<8x32xf32> to vector<8x32xbf16>
    %cst_41 = arith.constant dense<0.000000e+00> : vector<8x128xf32>
    %85 = tpu.matmul %84, %1, %cst_41 {dimension_numbers = #tpu.dot_dimension_numbers<[1], [0], [0], [1], [0, 0, 1, 1], [], []>} : vector<8x32xbf16>, vector<32x128xbf16>, vector<8x128xf32> -> vector<8x128xf32>
    %86 = arith.addf %20, %85 : vector<8x128xf32>
    %87 = arith.negf %86 : vector<8x128xf32>
    %88 = math.exp %87 : vector<8x128xf32>
    %cst_42 = arith.constant 1.000000e+00 : f32
    %89 = vector.broadcast %cst_42 : f32 to vector<8x128xf32>
    %90 = arith.addf %89, %88 : vector<8x128xf32>
    %91 = arith.divf %89, %90 : vector<8x128xf32>
    %92 = math.tanh %86 : vector<8x128xf32>
    %93 = vector.extract_strided_slice %91 {offsets = [0, 0], sizes = [8, 32], strides = [1, 1]} : vector<8x128xf32> to vector<8x32xf32>
    %94 = vector.extract_strided_slice %91 {offsets = [0, 32], sizes = [8, 32], strides = [1, 1]} : vector<8x128xf32> to vector<8x32xf32>
    %95 = vector.extract_strided_slice %92 {offsets = [0, 64], sizes = [8, 32], strides = [1, 1]} : vector<8x128xf32> to vector<8x32xf32>
    %96 = vector.extract_strided_slice %91 {offsets = [0, 96], sizes = [8, 32], strides = [1, 1]} : vector<8x128xf32> to vector<8x32xf32>
    %97 = arith.mulf %94, %81 : vector<8x32xf32>
    %98 = arith.mulf %93, %95 : vector<8x32xf32>
    %99 = arith.addf %97, %98 : vector<8x32xf32>
    %100 = math.tanh %99 : vector<8x32xf32>
    %101 = arith.mulf %96, %100 : vector<8x32xf32>
    %102 = arith.truncf %101 : vector<8x32xf32> to vector<8x32xbf16>
    %cst_43 = arith.constant dense<0.000000e+00> : vector<8x128xf32>
    %103 = tpu.matmul %102, %1, %cst_43 {dimension_numbers = #tpu.dot_dimension_numbers<[1], [0], [0], [1], [0, 0, 1, 1], [], []>} : vector<8x32xbf16>, vector<32x128xbf16>, vector<8x128xf32> -> vector<8x128xf32>
    %104 = arith.addf %25, %103 : vector<8x128xf32>
    %105 = arith.negf %104 : vector<8x128xf32>
    %106 = math.exp %105 : vector<8x128xf32>
    %cst_44 = arith.constant 1.000000e+00 : f32
    %107 = vector.broadcast %cst_44 : f32 to vector<8x128xf32>
    %108 = arith.addf %107, %106 : vector<8x128xf32>
    %109 = arith.divf %107, %108 : vector<8x128xf32>
    %110 = math.tanh %104 : vector<8x128xf32>
    %111 = vector.extract_strided_slice %109 {offsets = [0, 0], sizes = [8, 32], strides = [1, 1]} : vector<8x128xf32> to vector<8x32xf32>
    %112 = vector.extract_strided_slice %109 {offsets = [0, 32], sizes = [8, 32], strides = [1, 1]} : vector<8x128xf32> to vector<8x32xf32>
    %113 = vector.extract_strided_slice %110 {offsets = [0, 64], sizes = [8, 32], strides = [1, 1]} : vector<8x128xf32> to vector<8x32xf32>
    %114 = vector.extract_strided_slice %109 {offsets = [0, 96], sizes = [8, 32], strides = [1, 1]} : vector<8x128xf32> to vector<8x32xf32>
    %115 = arith.mulf %112, %99 : vector<8x32xf32>
    %116 = arith.mulf %111, %113 : vector<8x32xf32>
    %117 = arith.addf %115, %116 : vector<8x32xf32>
    %118 = math.tanh %117 : vector<8x32xf32>
    %119 = arith.mulf %114, %118 : vector<8x32xf32>
    %120 = arith.truncf %119 : vector<8x32xf32> to vector<8x32xbf16>
    %cst_45 = arith.constant dense<0.000000e+00> : vector<8x128xf32>
    %121 = tpu.matmul %120, %1, %cst_45 {dimension_numbers = #tpu.dot_dimension_numbers<[1], [0], [0], [1], [0, 0, 1, 1], [], []>} : vector<8x32xbf16>, vector<32x128xbf16>, vector<8x128xf32> -> vector<8x128xf32>
    %122 = arith.addf %30, %121 : vector<8x128xf32>
    %123 = arith.negf %122 : vector<8x128xf32>
    %124 = math.exp %123 : vector<8x128xf32>
    %cst_46 = arith.constant 1.000000e+00 : f32
    %125 = vector.broadcast %cst_46 : f32 to vector<8x128xf32>
    %126 = arith.addf %125, %124 : vector<8x128xf32>
    %127 = arith.divf %125, %126 : vector<8x128xf32>
    %128 = math.tanh %122 : vector<8x128xf32>
    %129 = vector.extract_strided_slice %127 {offsets = [0, 0], sizes = [8, 32], strides = [1, 1]} : vector<8x128xf32> to vector<8x32xf32>
    %130 = vector.extract_strided_slice %127 {offsets = [0, 32], sizes = [8, 32], strides = [1, 1]} : vector<8x128xf32> to vector<8x32xf32>
    %131 = vector.extract_strided_slice %128 {offsets = [0, 64], sizes = [8, 32], strides = [1, 1]} : vector<8x128xf32> to vector<8x32xf32>
    %132 = vector.extract_strided_slice %127 {offsets = [0, 96], sizes = [8, 32], strides = [1, 1]} : vector<8x128xf32> to vector<8x32xf32>
    %133 = arith.mulf %130, %117 : vector<8x32xf32>
    %134 = arith.mulf %129, %131 : vector<8x32xf32>
    %135 = arith.addf %133, %134 : vector<8x32xf32>
    %136 = math.tanh %135 : vector<8x32xf32>
    %137 = arith.mulf %132, %136 : vector<8x32xf32>
    %138 = arith.truncf %137 : vector<8x32xf32> to vector<8x32xbf16>
    %cst_47 = arith.constant dense<0.000000e+00> : vector<8x128xf32>
    %139 = tpu.matmul %138, %1, %cst_47 {dimension_numbers = #tpu.dot_dimension_numbers<[1], [0], [0], [1], [0, 0, 1, 1], [], []>} : vector<8x32xbf16>, vector<32x128xbf16>, vector<8x128xf32> -> vector<8x128xf32>
    %140 = arith.addf %35, %139 : vector<8x128xf32>
    %141 = arith.negf %140 : vector<8x128xf32>
    %142 = math.exp %141 : vector<8x128xf32>
    %cst_48 = arith.constant 1.000000e+00 : f32
    %143 = vector.broadcast %cst_48 : f32 to vector<8x128xf32>
    %144 = arith.addf %143, %142 : vector<8x128xf32>
    %145 = arith.divf %143, %144 : vector<8x128xf32>
    %146 = math.tanh %140 : vector<8x128xf32>
    %147 = vector.extract_strided_slice %145 {offsets = [0, 0], sizes = [8, 32], strides = [1, 1]} : vector<8x128xf32> to vector<8x32xf32>
    %148 = vector.extract_strided_slice %145 {offsets = [0, 32], sizes = [8, 32], strides = [1, 1]} : vector<8x128xf32> to vector<8x32xf32>
    %149 = vector.extract_strided_slice %146 {offsets = [0, 64], sizes = [8, 32], strides = [1, 1]} : vector<8x128xf32> to vector<8x32xf32>
    %150 = vector.extract_strided_slice %145 {offsets = [0, 96], sizes = [8, 32], strides = [1, 1]} : vector<8x128xf32> to vector<8x32xf32>
    %151 = arith.mulf %148, %135 : vector<8x32xf32>
    %152 = arith.mulf %147, %149 : vector<8x32xf32>
    %153 = arith.addf %151, %152 : vector<8x32xf32>
    %154 = math.tanh %153 : vector<8x32xf32>
    %155 = arith.mulf %150, %154 : vector<8x32xf32>
    %156 = arith.truncf %155 : vector<8x32xf32> to vector<8x32xbf16>
    %cst_49 = arith.constant dense<0.000000e+00> : vector<8x128xf32>
    %157 = tpu.matmul %156, %1, %cst_49 {dimension_numbers = #tpu.dot_dimension_numbers<[1], [0], [0], [1], [0, 0, 1, 1], [], []>} : vector<8x32xbf16>, vector<32x128xbf16>, vector<8x128xf32> -> vector<8x128xf32>
    %158 = arith.addf %40, %157 : vector<8x128xf32>
    %159 = arith.negf %158 : vector<8x128xf32>
    %160 = math.exp %159 : vector<8x128xf32>
    %cst_50 = arith.constant 1.000000e+00 : f32
    %161 = vector.broadcast %cst_50 : f32 to vector<8x128xf32>
    %162 = arith.addf %161, %160 : vector<8x128xf32>
    %163 = arith.divf %161, %162 : vector<8x128xf32>
    %164 = math.tanh %158 : vector<8x128xf32>
    %165 = vector.extract_strided_slice %163 {offsets = [0, 0], sizes = [8, 32], strides = [1, 1]} : vector<8x128xf32> to vector<8x32xf32>
    %166 = vector.extract_strided_slice %163 {offsets = [0, 32], sizes = [8, 32], strides = [1, 1]} : vector<8x128xf32> to vector<8x32xf32>
    %167 = vector.extract_strided_slice %164 {offsets = [0, 64], sizes = [8, 32], strides = [1, 1]} : vector<8x128xf32> to vector<8x32xf32>
    %168 = vector.extract_strided_slice %163 {offsets = [0, 96], sizes = [8, 32], strides = [1, 1]} : vector<8x128xf32> to vector<8x32xf32>
    %169 = arith.mulf %166, %153 : vector<8x32xf32>
    %170 = arith.mulf %165, %167 : vector<8x32xf32>
    %171 = arith.addf %169, %170 : vector<8x32xf32>
    %172 = math.tanh %171 : vector<8x32xf32>
    %173 = arith.mulf %168, %172 : vector<8x32xf32>
    %174 = arith.truncf %173 : vector<8x32xf32> to vector<8x32xbf16>
    %cst_51 = arith.constant dense<0.000000e+00> : vector<8x128xf32>
    %175 = tpu.matmul %174, %1, %cst_51 {dimension_numbers = #tpu.dot_dimension_numbers<[1], [0], [0], [1], [0, 0, 1, 1], [], []>} : vector<8x32xbf16>, vector<32x128xbf16>, vector<8x128xf32> -> vector<8x128xf32>
    %176 = arith.addf %45, %175 : vector<8x128xf32>
    %177 = arith.negf %176 : vector<8x128xf32>
    %178 = math.exp %177 : vector<8x128xf32>
    %cst_52 = arith.constant 1.000000e+00 : f32
    %179 = vector.broadcast %cst_52 : f32 to vector<8x128xf32>
    %180 = arith.addf %179, %178 : vector<8x128xf32>
    %181 = arith.divf %179, %180 : vector<8x128xf32>
    %182 = math.tanh %176 : vector<8x128xf32>
    %183 = vector.extract_strided_slice %181 {offsets = [0, 0], sizes = [8, 32], strides = [1, 1]} : vector<8x128xf32> to vector<8x32xf32>
    %184 = vector.extract_strided_slice %181 {offsets = [0, 32], sizes = [8, 32], strides = [1, 1]} : vector<8x128xf32> to vector<8x32xf32>
    %185 = vector.extract_strided_slice %182 {offsets = [0, 64], sizes = [8, 32], strides = [1, 1]} : vector<8x128xf32> to vector<8x32xf32>
    %186 = vector.extract_strided_slice %181 {offsets = [0, 96], sizes = [8, 32], strides = [1, 1]} : vector<8x128xf32> to vector<8x32xf32>
    %187 = arith.mulf %184, %171 : vector<8x32xf32>
    %188 = arith.mulf %183, %185 : vector<8x32xf32>
    %189 = arith.addf %187, %188 : vector<8x32xf32>
    %190 = math.tanh %189 : vector<8x32xf32>
    %191 = arith.mulf %186, %190 : vector<8x32xf32>
    %192 = arith.truncf %191 : vector<8x32xf32> to vector<8x32xbf16>
    %cst_53 = arith.constant dense<0.000000e+00> : vector<8x128xf32>
    %193 = tpu.matmul %192, %2, %cst_53 {dimension_numbers = #tpu.dot_dimension_numbers<[1], [0], [0], [1], [0, 0, 1, 1], [], []>} : vector<8x32xbf16>, vector<32x128xbf16>, vector<8x128xf32> -> vector<8x128xf32>
    %194 = vector.broadcast %5 : vector<1x128xf32> to vector<8x128xf32>
    %195 = arith.addf %193, %194 : vector<8x128xf32>
    %196 = arith.truncf %191 : vector<8x32xf32> to vector<8x32xbf16>
    %cst_54 = arith.constant dense<0.000000e+00> : vector<8x128xf32>
    %197 = tpu.matmul %196, %3, %cst_54 {dimension_numbers = #tpu.dot_dimension_numbers<[1], [0], [0], [1], [0, 0, 1, 1], [], []>} : vector<8x32xbf16>, vector<32x128xbf16>, vector<8x128xf32> -> vector<8x128xf32>
    %198 = arith.addf %195, %197 : vector<8x128xf32>
    %199 = arith.negf %198 : vector<8x128xf32>
    %200 = math.exp %199 : vector<8x128xf32>
    %cst_55 = arith.constant 1.000000e+00 : f32
    %201 = vector.broadcast %cst_55 : f32 to vector<8x128xf32>
    %202 = arith.addf %201, %200 : vector<8x128xf32>
    %203 = arith.divf %201, %202 : vector<8x128xf32>
    %204 = math.tanh %198 : vector<8x128xf32>
    %205 = vector.extract_strided_slice %203 {offsets = [0, 0], sizes = [8, 32], strides = [1, 1]} : vector<8x128xf32> to vector<8x32xf32>
    %206 = vector.extract_strided_slice %203 {offsets = [0, 32], sizes = [8, 32], strides = [1, 1]} : vector<8x128xf32> to vector<8x32xf32>
    %207 = vector.extract_strided_slice %204 {offsets = [0, 64], sizes = [8, 32], strides = [1, 1]} : vector<8x128xf32> to vector<8x32xf32>
    %208 = vector.extract_strided_slice %203 {offsets = [0, 96], sizes = [8, 32], strides = [1, 1]} : vector<8x128xf32> to vector<8x32xf32>
    %209 = arith.mulf %206, %189 : vector<8x32xf32>
    %210 = arith.mulf %205, %207 : vector<8x32xf32>
    %211 = arith.addf %209, %210 : vector<8x32xf32>
    %212 = math.tanh %211 : vector<8x32xf32>
    %213 = arith.mulf %208, %212 : vector<8x32xf32>
    %214 = arith.truncf %213 : vector<8x32xf32> to vector<8x32xbf16>
    %cst_56 = arith.constant dense<0.000000e+00> : vector<8x128xf32>
    %215 = tpu.matmul %214, %3, %cst_56 {dimension_numbers = #tpu.dot_dimension_numbers<[1], [0], [0], [1], [0, 0, 1, 1], [], []>} : vector<8x32xbf16>, vector<32x128xbf16>, vector<8x128xf32> -> vector<8x128xf32>
    %216 = arith.addf %195, %215 : vector<8x128xf32>
    %217 = arith.negf %216 : vector<8x128xf32>
    %218 = math.exp %217 : vector<8x128xf32>
    %cst_57 = arith.constant 1.000000e+00 : f32
    %219 = vector.broadcast %cst_57 : f32 to vector<8x128xf32>
    %220 = arith.addf %219, %218 : vector<8x128xf32>
    %221 = arith.divf %219, %220 : vector<8x128xf32>
    %222 = math.tanh %216 : vector<8x128xf32>
    %223 = vector.extract_strided_slice %221 {offsets = [0, 0], sizes = [8, 32], strides = [1, 1]} : vector<8x128xf32> to vector<8x32xf32>
    %224 = vector.extract_strided_slice %221 {offsets = [0, 32], sizes = [8, 32], strides = [1, 1]} : vector<8x128xf32> to vector<8x32xf32>
    %225 = vector.extract_strided_slice %222 {offsets = [0, 64], sizes = [8, 32], strides = [1, 1]} : vector<8x128xf32> to vector<8x32xf32>
    %226 = vector.extract_strided_slice %221 {offsets = [0, 96], sizes = [8, 32], strides = [1, 1]} : vector<8x128xf32> to vector<8x32xf32>
    %227 = arith.mulf %224, %211 : vector<8x32xf32>
    %228 = arith.mulf %223, %225 : vector<8x32xf32>
    %229 = arith.addf %227, %228 : vector<8x32xf32>
    %230 = math.tanh %229 : vector<8x32xf32>
    %231 = arith.mulf %226, %230 : vector<8x32xf32>
    %232 = arith.truncf %231 : vector<8x32xf32> to vector<8x32xbf16>
    %cst_58 = arith.constant dense<0.000000e+00> : vector<8x128xf32>
    %233 = tpu.matmul %232, %3, %cst_58 {dimension_numbers = #tpu.dot_dimension_numbers<[1], [0], [0], [1], [0, 0, 1, 1], [], []>} : vector<8x32xbf16>, vector<32x128xbf16>, vector<8x128xf32> -> vector<8x128xf32>
    %234 = arith.addf %195, %233 : vector<8x128xf32>
    %235 = arith.negf %234 : vector<8x128xf32>
    %236 = math.exp %235 : vector<8x128xf32>
    %cst_59 = arith.constant 1.000000e+00 : f32
    %237 = vector.broadcast %cst_59 : f32 to vector<8x128xf32>
    %238 = arith.addf %237, %236 : vector<8x128xf32>
    %239 = arith.divf %237, %238 : vector<8x128xf32>
    %240 = math.tanh %234 : vector<8x128xf32>
    %241 = vector.extract_strided_slice %239 {offsets = [0, 0], sizes = [8, 32], strides = [1, 1]} : vector<8x128xf32> to vector<8x32xf32>
    %242 = vector.extract_strided_slice %239 {offsets = [0, 32], sizes = [8, 32], strides = [1, 1]} : vector<8x128xf32> to vector<8x32xf32>
    %243 = vector.extract_strided_slice %240 {offsets = [0, 64], sizes = [8, 32], strides = [1, 1]} : vector<8x128xf32> to vector<8x32xf32>
    %244 = vector.extract_strided_slice %239 {offsets = [0, 96], sizes = [8, 32], strides = [1, 1]} : vector<8x128xf32> to vector<8x32xf32>
    %245 = arith.mulf %242, %229 : vector<8x32xf32>
    %246 = arith.mulf %241, %243 : vector<8x32xf32>
    %247 = arith.addf %245, %246 : vector<8x32xf32>
    %248 = math.tanh %247 : vector<8x32xf32>
    %249 = arith.mulf %244, %248 : vector<8x32xf32>
    %250 = arith.truncf %249 : vector<8x32xf32> to vector<8x32xbf16>
    %cst_60 = arith.constant dense<0.000000e+00> : vector<8x128xf32>
    %251 = tpu.matmul %250, %3, %cst_60 {dimension_numbers = #tpu.dot_dimension_numbers<[1], [0], [0], [1], [0, 0, 1, 1], [], []>} : vector<8x32xbf16>, vector<32x128xbf16>, vector<8x128xf32> -> vector<8x128xf32>
    %252 = arith.addf %195, %251 : vector<8x128xf32>
    %253 = arith.negf %252 : vector<8x128xf32>
    %254 = math.exp %253 : vector<8x128xf32>
    %cst_61 = arith.constant 1.000000e+00 : f32
    %255 = vector.broadcast %cst_61 : f32 to vector<8x128xf32>
    %256 = arith.addf %255, %254 : vector<8x128xf32>
    %257 = arith.divf %255, %256 : vector<8x128xf32>
    %258 = math.tanh %252 : vector<8x128xf32>
    %259 = vector.extract_strided_slice %257 {offsets = [0, 0], sizes = [8, 32], strides = [1, 1]} : vector<8x128xf32> to vector<8x32xf32>
    %260 = vector.extract_strided_slice %257 {offsets = [0, 32], sizes = [8, 32], strides = [1, 1]} : vector<8x128xf32> to vector<8x32xf32>
    %261 = vector.extract_strided_slice %258 {offsets = [0, 64], sizes = [8, 32], strides = [1, 1]} : vector<8x128xf32> to vector<8x32xf32>
    %262 = vector.extract_strided_slice %257 {offsets = [0, 96], sizes = [8, 32], strides = [1, 1]} : vector<8x128xf32> to vector<8x32xf32>
    %263 = arith.mulf %260, %247 : vector<8x32xf32>
    %264 = arith.mulf %259, %261 : vector<8x32xf32>
    %265 = arith.addf %263, %264 : vector<8x32xf32>
    %266 = math.tanh %265 : vector<8x32xf32>
    %267 = arith.mulf %262, %266 : vector<8x32xf32>
    %268 = arith.truncf %267 : vector<8x32xf32> to vector<8x32xbf16>
    %cst_62 = arith.constant dense<0.000000e+00> : vector<8x128xf32>
    %269 = tpu.matmul %268, %3, %cst_62 {dimension_numbers = #tpu.dot_dimension_numbers<[1], [0], [0], [1], [0, 0, 1, 1], [], []>} : vector<8x32xbf16>, vector<32x128xbf16>, vector<8x128xf32> -> vector<8x128xf32>
    %270 = arith.addf %195, %269 : vector<8x128xf32>
    %271 = arith.negf %270 : vector<8x128xf32>
    %272 = math.exp %271 : vector<8x128xf32>
    %cst_63 = arith.constant 1.000000e+00 : f32
    %273 = vector.broadcast %cst_63 : f32 to vector<8x128xf32>
    %274 = arith.addf %273, %272 : vector<8x128xf32>
    %275 = arith.divf %273, %274 : vector<8x128xf32>
    %276 = math.tanh %270 : vector<8x128xf32>
    %277 = vector.extract_strided_slice %275 {offsets = [0, 0], sizes = [8, 32], strides = [1, 1]} : vector<8x128xf32> to vector<8x32xf32>
    %278 = vector.extract_strided_slice %275 {offsets = [0, 32], sizes = [8, 32], strides = [1, 1]} : vector<8x128xf32> to vector<8x32xf32>
    %279 = vector.extract_strided_slice %276 {offsets = [0, 64], sizes = [8, 32], strides = [1, 1]} : vector<8x128xf32> to vector<8x32xf32>
    %280 = vector.extract_strided_slice %275 {offsets = [0, 96], sizes = [8, 32], strides = [1, 1]} : vector<8x128xf32> to vector<8x32xf32>
    %281 = arith.mulf %278, %265 : vector<8x32xf32>
    %282 = arith.mulf %277, %279 : vector<8x32xf32>
    %283 = arith.addf %281, %282 : vector<8x32xf32>
    %284 = math.tanh %283 : vector<8x32xf32>
    %285 = arith.mulf %280, %284 : vector<8x32xf32>
    %286 = arith.truncf %285 : vector<8x32xf32> to vector<8x32xbf16>
    %cst_64 = arith.constant dense<0.000000e+00> : vector<8x128xf32>
    %287 = tpu.matmul %286, %3, %cst_64 {dimension_numbers = #tpu.dot_dimension_numbers<[1], [0], [0], [1], [0, 0, 1, 1], [], []>} : vector<8x32xbf16>, vector<32x128xbf16>, vector<8x128xf32> -> vector<8x128xf32>
    %288 = arith.addf %195, %287 : vector<8x128xf32>
    %289 = arith.negf %288 : vector<8x128xf32>
    %290 = math.exp %289 : vector<8x128xf32>
    %cst_65 = arith.constant 1.000000e+00 : f32
    %291 = vector.broadcast %cst_65 : f32 to vector<8x128xf32>
    %292 = arith.addf %291, %290 : vector<8x128xf32>
    %293 = arith.divf %291, %292 : vector<8x128xf32>
    %294 = math.tanh %288 : vector<8x128xf32>
    %295 = vector.extract_strided_slice %293 {offsets = [0, 0], sizes = [8, 32], strides = [1, 1]} : vector<8x128xf32> to vector<8x32xf32>
    %296 = vector.extract_strided_slice %293 {offsets = [0, 32], sizes = [8, 32], strides = [1, 1]} : vector<8x128xf32> to vector<8x32xf32>
    %297 = vector.extract_strided_slice %294 {offsets = [0, 64], sizes = [8, 32], strides = [1, 1]} : vector<8x128xf32> to vector<8x32xf32>
    %298 = vector.extract_strided_slice %293 {offsets = [0, 96], sizes = [8, 32], strides = [1, 1]} : vector<8x128xf32> to vector<8x32xf32>
    %299 = arith.mulf %296, %283 : vector<8x32xf32>
    %300 = arith.mulf %295, %297 : vector<8x32xf32>
    %301 = arith.addf %299, %300 : vector<8x32xf32>
    %302 = math.tanh %301 : vector<8x32xf32>
    %303 = arith.mulf %298, %302 : vector<8x32xf32>
    %304 = arith.truncf %303 : vector<8x32xf32> to vector<8x32xbf16>
    %cst_66 = arith.constant dense<0.000000e+00> : vector<8x128xf32>
    %305 = tpu.matmul %304, %3, %cst_66 {dimension_numbers = #tpu.dot_dimension_numbers<[1], [0], [0], [1], [0, 0, 1, 1], [], []>} : vector<8x32xbf16>, vector<32x128xbf16>, vector<8x128xf32> -> vector<8x128xf32>
    %306 = arith.addf %195, %305 : vector<8x128xf32>
    %307 = arith.negf %306 : vector<8x128xf32>
    %308 = math.exp %307 : vector<8x128xf32>
    %cst_67 = arith.constant 1.000000e+00 : f32
    %309 = vector.broadcast %cst_67 : f32 to vector<8x128xf32>
    %310 = arith.addf %309, %308 : vector<8x128xf32>
    %311 = arith.divf %309, %310 : vector<8x128xf32>
    %312 = math.tanh %306 : vector<8x128xf32>
    %313 = vector.extract_strided_slice %311 {offsets = [0, 0], sizes = [8, 32], strides = [1, 1]} : vector<8x128xf32> to vector<8x32xf32>
    %314 = vector.extract_strided_slice %311 {offsets = [0, 32], sizes = [8, 32], strides = [1, 1]} : vector<8x128xf32> to vector<8x32xf32>
    %315 = vector.extract_strided_slice %312 {offsets = [0, 64], sizes = [8, 32], strides = [1, 1]} : vector<8x128xf32> to vector<8x32xf32>
    %316 = vector.extract_strided_slice %311 {offsets = [0, 96], sizes = [8, 32], strides = [1, 1]} : vector<8x128xf32> to vector<8x32xf32>
    %317 = arith.mulf %314, %301 : vector<8x32xf32>
    %318 = arith.mulf %313, %315 : vector<8x32xf32>
    %319 = arith.addf %317, %318 : vector<8x32xf32>
    %320 = math.tanh %319 : vector<8x32xf32>
    %321 = arith.mulf %316, %320 : vector<8x32xf32>
    %322 = arith.truncf %321 : vector<8x32xf32> to vector<8x32xbf16>
    %cst_68 = arith.constant dense<0.000000e+00> : vector<8x128xf32>
    %323 = tpu.matmul %322, %3, %cst_68 {dimension_numbers = #tpu.dot_dimension_numbers<[1], [0], [0], [1], [0, 0, 1, 1], [], []>} : vector<8x32xbf16>, vector<32x128xbf16>, vector<8x128xf32> -> vector<8x128xf32>
    %324 = arith.addf %195, %323 : vector<8x128xf32>
    %325 = arith.negf %324 : vector<8x128xf32>
    %326 = math.exp %325 : vector<8x128xf32>
    %cst_69 = arith.constant 1.000000e+00 : f32
    %327 = vector.broadcast %cst_69 : f32 to vector<8x128xf32>
    %328 = arith.addf %327, %326 : vector<8x128xf32>
    %329 = arith.divf %327, %328 : vector<8x128xf32>
    %330 = math.tanh %324 : vector<8x128xf32>
    %331 = vector.extract_strided_slice %329 {offsets = [0, 0], sizes = [8, 32], strides = [1, 1]} : vector<8x128xf32> to vector<8x32xf32>
    %332 = vector.extract_strided_slice %329 {offsets = [0, 32], sizes = [8, 32], strides = [1, 1]} : vector<8x128xf32> to vector<8x32xf32>
    %333 = vector.extract_strided_slice %330 {offsets = [0, 64], sizes = [8, 32], strides = [1, 1]} : vector<8x128xf32> to vector<8x32xf32>
    %334 = vector.extract_strided_slice %329 {offsets = [0, 96], sizes = [8, 32], strides = [1, 1]} : vector<8x128xf32> to vector<8x32xf32>
    %335 = arith.mulf %332, %319 : vector<8x32xf32>
    %336 = arith.mulf %331, %333 : vector<8x32xf32>
    %337 = arith.addf %335, %336 : vector<8x32xf32>
    %338 = math.tanh %337 : vector<8x32xf32>
    %339 = arith.mulf %334, %338 : vector<8x32xf32>
    %340 = tpu.concatenate %213, %231, %249, %267, %285, %303, %321, %339 in 1 : vector<8x32xf32>, vector<8x32xf32>, vector<8x32xf32>, vector<8x32xf32>, vector<8x32xf32>, vector<8x32xf32>, vector<8x32xf32>, vector<8x32xf32> -> vector<8x256xf32>
    %c0_70 = arith.constant 0 : index
    %c0_71 = arith.constant 0 : index
    %341 = vector.load %arg8[%c0_70, %c0_71] : memref<8x256xf32, #tpu.memory_space<vmem>>, vector<8x256xf32>
    tpu.vector_store %arg8[%c0_70, %c0_71], %340 {strides = array<i32>} : memref<8x256xf32, #tpu.memory_space<vmem>>, vector<8x256xf32>,
    return
  }
  func.func @transform_0(%arg0: i32) -> (i32, i32, i32) {
    %c0_i32 = arith.constant 0 : i32
    %c0_i32_0 = arith.constant 0 : i32
    %c0_i32_1 = arith.constant 0 : i32
    return %c0_i32, %arg0, %c0_i32_0 : i32, i32, i32
  }
  func.func @transform_1(%arg0: i32) -> (i32, i32) {
    %c0_i32 = arith.constant 0 : i32
    %c0_i32_0 = arith.constant 0 : i32
    %c0_i32_1 = arith.constant 0 : i32
    return %c0_i32, %c0_i32_0 : i32, i32
  }
  func.func @transform_2(%arg0: i32) -> (i32, i32) {
    %c0_i32 = arith.constant 0 : i32
    %c0_i32_0 = arith.constant 0 : i32
    %c0_i32_1 = arith.constant 0 : i32
    return %c0_i32, %c0_i32_0 : i32, i32
  }
  func.func @transform_3(%arg0: i32) -> (i32, i32) {
    %c0_i32 = arith.constant 0 : i32
    %c0_i32_0 = arith.constant 0 : i32
    %c0_i32_1 = arith.constant 0 : i32
    return %c0_i32, %c0_i32_0 : i32, i32
  }
  func.func @transform_4(%arg0: i32) -> (i32, i32) {
    %c0_i32 = arith.constant 0 : i32
    %c0_i32_0 = arith.constant 0 : i32
    %c0_i32_1 = arith.constant 0 : i32
    return %c0_i32, %c0_i32_0 : i32, i32
  }
  func.func @transform_5(%arg0: i32) -> (i32, i32) {
    %c0_i32 = arith.constant 0 : i32
    %c0_i32_0 = arith.constant 0 : i32
    %c0_i32_1 = arith.constant 0 : i32
    return %c0_i32, %c0_i32_0 : i32, i32
  }
  func.func @transform_6(%arg0: i32) -> (i32, i32) {
    %c0_i32 = arith.constant 0 : i32
    %c0_i32_0 = arith.constant 0 : i32
    %c0_i32_1 = arith.constant 0 : i32
    return %c0_i32, %c0_i32_0 : i32, i32
  }
  func.func @transform_7(%arg0: i32) -> (i32, i32) {
    %c0_i32 = arith.constant 0 : i32
    %c0_i32_0 = arith.constant 0 : i32
    return %arg0, %c0_i32 : i32, i32
  }
}

</mosaic_0001>

<bundles_post_ra>
// kernel: tpu_custom_call.1
= control target key start
LH: loop header
LB: loop body
LE: loop exit
PB: predicated region body
PF: predicated region fallthrough
CT: control target
= control target key end

     0   :  { %12 = vsyncpa [#allocation3], 0  ;;  %s1936_s0 = inlined_call_operand.hbm [shape: bf16[8,8,16], index: 0, kind: input, shape index: {}]   ;;  %s1937_s1 = inlined_call_operand.hbm [shape: bf16[16,128], index: 1, kind: input, shape index: {}]   ;;  %s1938_s2 = inlined_call_operand.hbm [shape: bf16[32,128], index: 2, kind: input, shape index: {}]   ;;  %s1939_s3 = inlined_call_operand.vmem [shape: f32[1,128], index: 3, kind: input, shape index: {}]   ;;  %s1940_s4 = inlined_call_operand.hbm [shape: bf16[32,128], index: 4, kind: input, shape index: {}]   ;;  %s1941_s5 = inlined_call_operand.hbm [shape: bf16[32,128], index: 5, kind: input, shape index: {}]   ;;  %s1942_s6 = inlined_call_operand.vmem [shape: f32[1,128], index: 6, kind: input, shape index: {}]   ;;  %s1943_s7 = inlined_call_operand.hbm [shape: f32[8,256], index: 7, kind: output, shape index: {}]  }
   0x1   :  { %13 = vsyncpa [#allocation6], 0 }
   0x2   :  { %14 = vsyncpa [#allocation9], 0 }
   0x3   :  { %15 = vsyncpa [#allocation4], 0  ;;  %s33_s26 = sshll.u32 %s1937_s1, 4  ;;  %s1673_s27 = smov [#allocation5]   ;;  %s34_s26 = int_to_ptr.hbm [resolvable:$true] %s33_s26 }
   0x4   :  { %s35_s28 = sshll.u32 %s1673_s27, 4  ;;  %s61_s8 = sshll.u32 %s1940_s4, 4  ;;  %s36_s28 = int_to_ptr.vmem [resolvable:$true] %s35_s28  ;;  %s62_s8 = int_to_ptr.hbm [resolvable:$true] %s61_s8 }
   0x5   :  { %s1674_s9 = smov 64   ;;  %s1675_s10 = smov 4  }
   0x6   :  { %41 = dma.hbm_to_vmem [thread:$0]  %s34_s26, 128, %s36_s28, [#allocation6], %s1674_s9, %s1674_s9, %s1675_s10  }
   0x7   :  { %s1676_s11 = smov [#allocation8]   ;;  %s20_s1 = sshll.u32 %s1936_s0, 4  ;;  %s21_s1 = int_to_ptr.hbm [resolvable:$true] %s20_s1 }
   0x8   :  { %s63_s12 = sshll.u32 %s1676_s11, 4  ;;  %s46_s4 = sshll.u32 %s1938_s2, 4  ;;  %s64_s12 = int_to_ptr.vmem [resolvable:$true] %s63_s12  ;;  %s47_s4 = int_to_ptr.hbm [resolvable:$true] %s46_s4 }
   0x9   :  { %69 = dma.hbm_to_vmem [thread:$0]  %s62_s8, 256, %s64_s12, [#allocation9], %s1674_s9, %s1674_s9, %s1675_s10  }
   0xa   :  { %s1677_s17 = smov [#allocation2]   ;;  %s1678_s19 = smov [#allocation7]  }
   0xb   :  { %s22_s18 = sshll.u32 %s1677_s17, 4  ;;  %s48_s20 = sshll.u32 %s1678_s19, 4  ;;  %s23_s18 = int_to_ptr.vmem [resolvable:$true] %s22_s18  ;;  %s49_s20 = int_to_ptr.vmem [resolvable:$true] %s48_s20 }
   0xc   :  { %28 = dma.hbm_to_vmem [thread:$0]  %s21_s1, 512, %s23_s18, [#allocation3], %s1674_s9, %s1674_s9, %s1675_s10  }
   0xd   :  { %s74_s22 = sshll.u32 %s1941_s5, 4  ;;  %s1679_s23 = smov [#allocation10]   ;;  %s75_s22 = int_to_ptr.hbm [resolvable:$true] %s74_s22 }
   0xe   :  { %54 = dma.hbm_to_vmem [thread:$0]  %s47_s4, 256, %s49_s20, [#allocation6], %s1674_s9, %s1674_s9, %s1675_s10  }
   0xf   :  { %s76_s2 = sshll.u32 %s1679_s23, 4  ;;  %s77_s2 = int_to_ptr.vmem [resolvable:$true] %s76_s2 }
  0x10   :  { %82 = dma.hbm_to_vmem [thread:$0]  %s75_s22, 256, %s77_s2, [#allocation9], %s1674_s9, %s1674_s9, %s1675_s10  }
  0x11   :  { %1665 = dma.done.wait [#allocation3], 512  }
  0x12   :  { %1666 = vsyncadd [#allocation3], 4294966784 }
  0x13   :  { %1667 = dma.done.wait [#allocation6], 384  }
  0x14   :  { %1668 = vsyncadd [#allocation6], 4294966912 }
  0x15   :  { %1669 = dma.done.wait [#allocation9], 512  }
  0x16   :  { %1670 = vsyncadd [#allocation9], 4294966784  ;;  %v1373_v0 = vld [vmem:[#allocation5] sm:$0xff]  ;;  %vm132_vm0 = vcmask 130048   ;;  %v1749_v2 = vld [vmem:[#allocation7 + $0x8] sm:$0xff]  ;;  %v1680_v5 = vmov 0  }
  0x17   :  { %143 = vmatpush.bf16.msra.mxu0 %v1373_v0  ;;  %v122_v1 = vld [vmem:[#allocation2] sm:$0xf]  ;;  %161 = vmatpush.bf16.msra.mxu1 %v1373_v0  ;;  %v1753_v3 = vld [vmem:[#allocation7] sm:$0xff]  ;;  %v204_v4 = vld [vmem:[#allocation2 + $0x10] sm:$0xf]  ;;  %vm287_vm5 = vcmask 261120  }
  0x18   :  { %179 = vmatpush.bf16.msra.mxu2 %v1373_v0  ;;  %197 = vmatpush.bf16.msra.mxu3 %v1373_v0  ;;  %v1764_v10 = vld [vmem:[%s1939_s3] ss:$0 sm:$0xff]  ;;  %s1681_s3 = smov 32   ;;  %v150_v35 = vld [vmem:[#allocation2 + $0x4] sm:$0xf]  ;;  %s1683_s27 = smov [#allocation11]  }
  0x19   :  { %v222_v36 = vld [vmem:[#allocation2 + $0x14] sm:$0xf]  ;;  %s1291_s28 = sshll.u32 %s1683_s27, 4  ;;  %s1293_s8 = sshll.u32 %s1943_s7, 4  ;;  %s1292_s28 = int_to_ptr.vmem [resolvable:$true] %s1291_s28  ;;  %s1294_s8 = int_to_ptr.hbm [resolvable:$true] %s1293_s8 }
  0x1a   :  { %1309 = vmatmul.msk.bf16.vlgmr.msra.gmra.mxu0 %vm132_vm0, %v122_v1  ;;  %1310 = vmatmul.msk.bf16.vlgmr.msra.gmra.mxu1 %vm132_vm0, %v150_v35 }
  0x1b   :  { %215 = vmatpush.bf16.msrb.mxu0 %v1373_v0  ;;  %233 = vmatpush.bf16.msrb.mxu1 %v1373_v0 }
  0x1c   :  { %251 = vmatpush.bf16.msrb.mxu2 %v1373_v0  ;;  %269 = vmatpush.bf16.msrb.mxu3 %v1373_v0 }
  0x1f   :  { %297 = vmatpush.bf16.msra.mxu0 %v1749_v2  ;;  %355 = vmatpush.bf16.msra.mxu1 %v1749_v2 }
  0x23   :  { %298 = vmatpush.bf16.msra.mxu0 %v1753_v3  ;;  %356 = vmatpush.bf16.msra.mxu1 %v1753_v3 }
  0x2a   :  { %1313 = vmatmul.msk.bf16.vlgmr.msrb.gmra.mxu0 %vm132_vm0, %v204_v4  ;;  %1314 = vmatmul.msk.bf16.vlgmr.msrb.gmra.mxu1 %vm132_vm0, %v222_v36 }
  0x2b   :  { %529 = vmatpush.bf16.msrb.mxu0 %v1749_v2  ;;  %587 = vmatpush.bf16.msrb.mxu1 %v1749_v2 }
  0x2f   :  { %530 = vmatpush.bf16.msrb.mxu0 %v1753_v3  ;;  %588 = vmatpush.bf16.msrb.mxu1 %v1753_v3 }
  0x3a   :  { %299 = vmatmul.bf16.vlgmr.msra.gmra.mxu0 %v1680_v5 }
  0x97   :  { %v145_v6 = vpop.f32.mrf.mxu0  ;;  %v163_v40 = vpop.f32.mrf.mxu1 }
  0x98   :  { %v146_v11 = vadd.f32 %v1764_v10, %v145_v6  ;;  %v164_v45 = vadd.f32 %v1764_v10, %v163_v40 }
  0x9f   :  { %v147_v7 = vpop.f32.mrf.mxu0  ;;  %v165_v41 = vpop.f32.mrf.mxu1 }
  0xa0   :  { %v168_v7 = vld [vmem:[#allocation2 + $0x8] sm:$0xf] }
  0xa1   :  { %1311 = vmatmul.msk.bf16.vlgmr.msra.gmra.mxu2 %vm132_vm0, %v168_v7 }
  0xa2   :  { %413 = vmatpush.bf16.msra.mxu2 %v1749_v2 }
  0xa6   :  { %414 = vmatpush.bf16.msra.mxu2 %v1753_v3 }
  0xa7   :  { %v1759_v8 = vpop.f32.mrf.mxu0  ;;  %v1777_v42 = vpop.f32.mrf.mxu1 }
  0xaf   :  { %v219_v9 = vpop.f32.mrf.mxu0  ;;  %v237_v44 = vpop.f32.mrf.mxu1 }
  0xb0   :  { %v240_v9 = vld [vmem:[#allocation2 + $0x18] sm:$0xf]  ;;  %v186_v44 = vld [vmem:[#allocation2 + $0xc] sm:$0xf] }
  0xb1   :  { %1315 = vmatmul.msk.bf16.vlgmr.msrb.gmra.mxu2 %vm132_vm0, %v240_v9  ;;  %1312 = vmatmul.msk.bf16.vlgmr.msra.gmra.mxu3 %vm132_vm0, %v186_v44 }
  0xb2   :  { %645 = vmatpush.bf16.msrb.mxu2 %v1749_v2  ;;  %471 = vmatpush.bf16.msra.mxu3 %v1749_v2 }
  0xb6   :  { %646 = vmatpush.bf16.msrb.mxu2 %v1753_v3  ;;  %472 = vmatpush.bf16.msra.mxu3 %v1753_v3 }
  0xb7   :  { %v300_v12 = vpop.f32.mrf.mxu0 }
  0xb8   :  { %v304_v13 = vadd.f32 %v300_v12, %v146_v11 }
  0xba   :  { %1393 = vtanh.f32 %v304_v13  ;;  %v1325_v16 = vmul.f32 -1.442695, %v304_v13 }
  0xbc   :  { %1395 = vpow2.f32 %v1325_v16 }
  0xbf   :  { %v302_v14 = vpop.f32.mrf.mxu0 }
  0xc0   :  { %v1394_v15 = vpop.eup %1393 }
  0xc1   :  { %327 = vrot.lane.b32.xlu0 %v1394_v15, %s1674_s9 }
  0xc2   :  { %v1396_v17 = vpop.eup %1395 }
  0xc3   :  { %v308_v18 = vadd.f32 1.0, %v1396_v17 }
  0xc5   :  { %1397 = vrcp.f32 %v308_v18  ;;  %v320_v24 = vand.u32 2147483648, %v308_v18  ;;  %vm314_vm2 = vweird.f32 %v308_v18  ;;  %v318_v25 = vand.u32 2147483647, %v308_v18 }
  0xc7   :  { %v321_v27 = vor.u32 1.1754944e-38, %v320_v24  ;;  %vm319_vm4 = vcmp.eq.f32.partialorder %v318_v25, 8.507059e+37 }
  0xcb   :  { %v1398_v19 = vpop.eup %1397 }
  0xcc   :  { %v310_v20 = vmul.f32 %v1398_v19, %v308_v18  ;;  %vm315_vm1 = vweird.f32 %v1398_v19 }
  0xcd   :  { %vm316_vm3 = vmor %vm314_vm2, %vm315_vm1 }
  0xce   :  { %v311_v21 = vsub.f32 1.0, %v310_v20 }
  0xd0   :  { %v312_v22 = vmul.f32 %v1398_v19, %v311_v21 }
  0xd2   :  { %v313_v23 = vadd.f32 %v1398_v19, %v312_v22 }
  0xd4   :  { %v317_v26 = vsel %vm316_vm3, %v1398_v19, %v313_v23 }
  0xd5   :  { %v322_v29 = vsel %vm319_vm4, %v321_v27, %v317_v26 }
  0xd6   :  { %v325_v31 = vmul.f32 0.0, %v322_v29 }
 0x124   :  { %v181_v14 = vpop.f32.mrf.mxu2 }
 0x125   :  { %v182_v19 = vadd.f32 %v1764_v10, %v181_v14 }
 0x12c   :  { %v183_v15 = vpop.f32.mrf.mxu2 }
 0x133   :  { %v328_v28 = vpop.permute.xlu0 %327 }
 0x134   :  { %v330_v30 = vmul.f32 %v328_v28, %v322_v29  ;;  %v1792_v17 = vpop.f32.mrf.mxu2 }
 0x136   :  { %332 = vrot.lane.b32.xlu0 %v330_v30, %s1681_s3 }
 0x13c   :  { %v255_v18 = vpop.f32.mrf.mxu2 }
 0x1a8   :  { %v333_v32 = vpop.permute.xlu0 %332 }
 0x1a9   :  { %v335_v33 = vadd.f32 %v333_v32, %v325_v31 }
 0x1ab   :  { %1399 = vtanh.f32 %v335_v33 }
 0x1b1   :  { %v1400_v34 = vpop.eup %1399 }
 0x1b2   :  { %338 = vrot.lane.b32.xlu1 %v1400_v34, %s1674_s9 }
 0x224   :  { %v339_v37 = vpop.permute.xlu1 %338 }
 0x225   :  { %v341_v38 = vmul.f32 %v339_v37, %v322_v29 }
 0x227   :  { %v342_v39 = vpack.c.bf16 %v341_v38, %v341_v38 }
 0x229   :  { %344 = vrot.lane.b32.xlu1 %v342_v39, %s1681_s3 }
 0x29b   :  { %v345_v43 = vpop.permute.xlu1 %344 }
 0x29c   :  { %1326 = vmatmul.msk.bf16.vlgmr.msra.gmra.mxu1 %vm287_vm5, %v345_v43 }
 0x319   :  { %v358_v46 = vpop.f32.mrf.mxu1 }
 0x31a   :  { %v362_v47 = vadd.f32 %v358_v46, %v164_v45  ;;  %v258_v45 = vld [vmem:[#allocation2 + $0x1c] sm:$0xf] }
 0x31b   :  { %1316 = vmatmul.msk.bf16.vlgmr.msrb.gmra.mxu3 %vm132_vm0, %v258_v45 }
 0x31c   :  { %1401 = vtanh.f32 %v362_v47  ;;  %v1327_v50 = vmul.f32 -1.442695, %v362_v47  ;;  %703 = vmatpush.bf16.msrb.mxu3 %v1749_v2 }
 0x31e   :  { %1403 = vpow2.f32 %v1327_v50  ;;  %v199_v50 = vpop.f32.mrf.mxu3 }
 0x320   :  { %704 = vmatpush.bf16.msrb.mxu3 %v1753_v3 }
 0x321   :  { %v360_v48 = vpop.f32.mrf.mxu1 }
 0x322   :  { %v1402_v49 = vpop.eup %1401 }
 0x323   :  { %385 = vrot.lane.b32.xlu2 %v1402_v49, %s1674_s9 }
 0x324   :  { %v1404_v51 = vpop.eup %1403 }
 0x325   :  { %v366_v52 = vadd.f32 1.0, %v1404_v51 }
 0x326   :  { %v201_v51 = vpop.f32.mrf.mxu3 }
 0x327   :  { %1405 = vrcp.f32 %v366_v52  ;;  %v378_v58 = vand.u32 2147483648, %v366_v52  ;;  %vm372_vm7 = vweird.f32 %v366_v52  ;;  %v376_v59 = vand.u32 2147483647, %v366_v52 }
 0x329   :  { %v379_v61 = vor.u32 1.1754944e-38, %v378_v58  ;;  %vm377_vm9 = vcmp.eq.f32.partialorder %v376_v59, 8.507059e+37 }
 0x32d   :  { %v1406_v53 = vpop.eup %1405 }
 0x32e   :  { %v368_v54 = vmul.f32 %v1406_v53, %v366_v52  ;;  %vm373_vm6 = vweird.f32 %v1406_v53 }
 0x32f   :  { %vm374_vm8 = vmor %vm372_vm7, %vm373_vm6 }
 0x330   :  { %v369_v55 = vsub.f32 1.0, %v368_v54  ;;  %v200_v54 = vadd.f32 %v1764_v10, %v199_v50 }
 0x332   :  { %v370_v56 = vmul.f32 %v1406_v53, %v369_v55 }
 0x334   :  { %v371_v57 = vadd.f32 %v1406_v53, %v370_v56 }
 0x336   :  { %v375_v60 = vsel %vm374_vm8, %v1406_v53, %v371_v57 }
 0x337   :  { %v380_v63 = vsel %vm377_vm9, %v379_v61, %v375_v60 }
 0x338   :  { %v383_v1 = vmul.f32 %v380_v63, %v335_v33 }
 0x37d   :  { %v386_v62 = vpop.permute.xlu2 %385 }
 0x37e   :  { %v388_v0 = vmul.f32 %v386_v62, %v380_v63 }
 0x380   :  { %390 = vrot.lane.b32.xlu2 %v388_v0, %s1681_s3 }
 0x39e   :  { %v1806_v52 = vpop.f32.mrf.mxu3 }
 0x3a6   :  { %v273_v53 = vpop.f32.mrf.mxu3 }
 0x3da   :  { %v391_v4 = vpop.permute.xlu2 %390 }
 0x3db   :  { %v393_v5 = vadd.f32 %v391_v4, %v383_v1 }
 0x3dd   :  { %1407 = vtanh.f32 %v393_v5 }
 0x3e3   :  { %v1408_v6 = vpop.eup %1407 }
 0x3e4   :  { %396 = vrot.lane.b32.xlu0 %v1408_v6, %s1674_s9 }
 0x456   :  { %v397_v11 = vpop.permute.xlu0 %396 }
 0x457   :  { %v399_v12 = vmul.f32 %v397_v11, %v380_v63 }
 0x459   :  { %v400_v13 = vpack.c.bf16 %v399_v12, %v399_v12 }
 0x45b   :  { %402 = vrot.lane.b32.xlu1 %v400_v13, %s1681_s3 }
 0x4cd   :  { %v403_v16 = vpop.permute.xlu1 %402 }
 0x4ce   :  { %1328 = vmatmul.msk.bf16.vlgmr.msra.gmra.mxu2 %vm287_vm5, %v403_v16 }
 0x551   :  { %v416_v20 = vpop.f32.mrf.mxu2 }
 0x552   :  { %v420_v21 = vadd.f32 %v416_v20, %v182_v19 }
 0x554   :  { %1409 = vtanh.f32 %v420_v21  ;;  %v1329_v24 = vmul.f32 -1.442695, %v420_v21  ;;  %v218_v21 = vadd.f32 %v1764_v10, %v1759_v8 }
 0x556   :  { %1411 = vpow2.f32 %v1329_v24 }
 0x559   :  { %v418_v22 = vpop.f32.mrf.mxu2 }
 0x55a   :  { %v1410_v23 = vpop.eup %1409 }
 0x55b   :  { %443 = vrot.lane.b32.xlu2 %v1410_v23, %s1674_s9 }
 0x55c   :  { %v1412_v25 = vpop.eup %1411 }
 0x55d   :  { %v424_v26 = vadd.f32 1.0, %v1412_v25 }
 0x55f   :  { %1413 = vrcp.f32 %v424_v26  ;;  %v436_v32 = vand.u32 2147483648, %v424_v26  ;;  %vm430_vm11 = vweird.f32 %v424_v26  ;;  %v434_v33 = vand.u32 2147483647, %v424_v26 }
 0x561   :  { %v437_v35 = vor.u32 1.1754944e-38, %v436_v32  ;;  %vm435_vm13 = vcmp.eq.f32.partialorder %v434_v33, 8.507059e+37 }
 0x565   :  { %v1414_v27 = vpop.eup %1413 }
 0x566   :  { %v426_v28 = vmul.f32 %v1414_v27, %v424_v26  ;;  %vm431_vm10 = vweird.f32 %v1414_v27 }
 0x567   :  { %vm432_vm12 = vmor %vm430_vm11, %vm431_vm10 }
 0x568   :  { %v427_v29 = vsub.f32 1.0, %v426_v28 }
 0x56a   :  { %v428_v30 = vmul.f32 %v1414_v27, %v427_v29 }
 0x56c   :  { %v429_v31 = vadd.f32 %v1414_v27, %v428_v30 }
 0x56e   :  { %v433_v34 = vsel %vm432_vm12, %v1414_v27, %v429_v31 }
 0x56f   :  { %v438_v37 = vsel %vm435_vm13, %v437_v35, %v433_v34 }
 0x570   :  { %v441_v39 = vmul.f32 %v438_v37, %v393_v5 }
 0x5b5   :  { %v444_v36 = vpop.permute.xlu2 %443 }
 0x5b6   :  { %v446_v38 = vmul.f32 %v444_v36, %v438_v37 }
 0x5b8   :  { %448 = vrot.lane.b32.xlu0 %v446_v38, %s1681_s3 }
 0x62a   :  { %v449_v40 = vpop.permute.xlu0 %448 }
 0x62b   :  { %v451_v41 = vadd.f32 %v449_v40, %v441_v39 }
 0x62d   :  { %1415 = vtanh.f32 %v451_v41 }
 0x633   :  { %v1416_v43 = vpop.eup %1415 }
 0x634   :  { %454 = vrot.lane.b32.xlu1 %v1416_v43, %s1674_s9 }
 0x6a6   :  { %v455_v46 = vpop.permute.xlu1 %454 }
 0x6a7   :  { %v457_v47 = vmul.f32 %v455_v46, %v438_v37 }
 0x6a9   :  { %v458_v48 = vpack.c.bf16 %v457_v47, %v457_v47 }
 0x6ab   :  { %460 = vrot.lane.b32.xlu2 %v458_v48, %s1681_s3 }
 0x705   :  { %v461_v49 = vpop.permute.xlu2 %460 }
 0x706   :  { %1330 = vmatmul.msk.bf16.vlgmr.msra.gmra.mxu3 %vm287_vm5, %v461_v49  ;;  %v236_v49 = vadd.f32 %v1764_v10, %v1777_v42 }
 0x789   :  { %v474_v55 = vpop.f32.mrf.mxu3 }
 0x78a   :  { %v478_v56 = vadd.f32 %v474_v55, %v200_v54 }
 0x78c   :  { %1417 = vtanh.f32 %v478_v56  ;;  %v1331_v57 = vmul.f32 -1.442695, %v478_v56 }
 0x78e   :  { %1419 = vpow2.f32 %v1331_v57 }
 0x791   :  { %v476_v2 = vpop.f32.mrf.mxu3 }
 0x792   :  { %v1418_v3 = vpop.eup %1417 }
 0x793   :  { %501 = vrot.lane.b32.xlu0 %v1418_v3, %s1674_s9 }
 0x794   :  { %v1420_v58 = vpop.eup %1419 }
 0x795   :  { %v482_v59 = vadd.f32 1.0, %v1420_v58 }
 0x797   :  { %1421 = vrcp.f32 %v482_v59  ;;  %v494_v1 = vand.u32 2147483648, %v482_v59  ;;  %vm488_vm15 = vweird.f32 %v482_v59  ;;  %v492_v4 = vand.u32 2147483647, %v482_v59 }
 0x799   :  { %v495_v6 = vor.u32 1.1754944e-38, %v494_v1  ;;  %vm493_vm1 = vcmp.eq.f32.partialorder %v492_v4, 8.507059e+37 }
 0x79d   :  { %v1422_v60 = vpop.eup %1421 }
 0x79e   :  { %v484_v61 = vmul.f32 %v1422_v60, %v482_v59  ;;  %vm489_vm14 = vweird.f32 %v1422_v60 }
 0x79f   :  { %vm490_vm0 = vmor %vm488_vm15, %vm489_vm14 }
 0x7a0   :  { %v485_v62 = vsub.f32 1.0, %v484_v61 }
 0x7a2   :  { %v486_v63 = vmul.f32 %v1422_v60, %v485_v62 }
 0x7a4   :  { %v487_v0 = vadd.f32 %v1422_v60, %v486_v63 }
 0x7a6   :  { %v491_v5 = vsel %vm490_vm0, %v1422_v60, %v487_v0 }
 0x7a7   :  { %v496_v9 = vsel %vm493_vm1, %v495_v6, %v491_v5 }
 0x7a8   :  { %v499_v12 = vmul.f32 %v496_v9, %v451_v41 }
 0x805   :  { %v502_v7 = vpop.permute.xlu0 %501 }
 0x806   :  { %v504_v11 = vmul.f32 %v502_v7, %v496_v9 }
 0x808   :  { %506 = vrot.lane.b32.xlu1 %v504_v11, %s1681_s3 }
 0x87a   :  { %v507_v13 = vpop.permute.xlu1 %506 }
 0x87b   :  { %v509_v14 = vadd.f32 %v507_v13, %v499_v12 }
 0x87d   :  { %1423 = vtanh.f32 %v509_v14 }
 0x883   :  { %v1424_v15 = vpop.eup %1423 }
 0x884   :  { %512 = vrot.lane.b32.xlu2 %v1424_v15, %s1674_s9  ;;  %v254_v15 = vadd.f32 %v1764_v10, %v1792_v17 }
 0x8de   :  { %v513_v16 = vpop.permute.xlu2 %512 }
 0x8df   :  { %v515_v18 = vmul.f32 %v513_v16, %v496_v9 }
 0x8e1   :  { %v516_v19 = vpack.c.bf16 %v515_v18, %v515_v18 }
 0x8e3   :  { %518 = vrot.lane.b32.xlu0 %v516_v19, %s1681_s3 }
 0x955   :  { %v519_v20 = vpop.permute.xlu0 %518 }
 0x956   :  { %1332 = vmatmul.msk.bf16.vlgmr.msrb.gmra.mxu0 %vm287_vm5, %v519_v20 }
 0x9d3   :  { %v532_v22 = vpop.f32.mrf.mxu0 }
 0x9d4   :  { %v536_v23 = vadd.f32 %v532_v22, %v218_v21 }
 0x9d6   :  { %1425 = vtanh.f32 %v536_v23  ;;  %v1333_v26 = vmul.f32 -1.442695, %v536_v23 }
 0x9d8   :  { %1427 = vpow2.f32 %v1333_v26 }
 0x9db   :  { %v534_v24 = vpop.f32.mrf.mxu0 }
 0x9dc   :  { %v1426_v25 = vpop.eup %1425 }
 0x9dd   :  { %559 = vrot.lane.b32.xlu1 %v1426_v25, %s1674_s9 }
 0x9de   :  { %v1428_v27 = vpop.eup %1427 }
 0x9df   :  { %v540_v28 = vadd.f32 1.0, %v1428_v27 }
 0x9e1   :  { %1429 = vrcp.f32 %v540_v28  ;;  %v552_v34 = vand.u32 2147483648, %v540_v28  ;;  %vm546_vm3 = vweird.f32 %v540_v28  ;;  %v550_v8 = vand.u32 2147483647, %v540_v28 }
 0x9e3   :  { %v553_v36 = vor.u32 1.1754944e-38, %v552_v34  ;;  %vm551_vm6 = vcmp.eq.f32.partialorder %v550_v8, 8.507059e+37 }
 0x9e7   :  { %v1430_v29 = vpop.eup %1429 }
 0x9e8   :  { %v542_v30 = vmul.f32 %v1430_v29, %v540_v28  ;;  %vm547_vm2 = vweird.f32 %v1430_v29 }
 0x9e9   :  { %vm548_vm4 = vmor %vm546_vm3, %vm547_vm2 }
 0x9ea   :  { %v543_v31 = vsub.f32 1.0, %v542_v30 }
 0x9ec   :  { %v544_v32 = vmul.f32 %v1430_v29, %v543_v31 }
 0x9ee   :  { %v545_v33 = vadd.f32 %v1430_v29, %v544_v32 }
 0x9f0   :  { %v549_v35 = vsel %vm548_vm4, %v1430_v29, %v545_v33 }
 0x9f1   :  { %v554_v38 = vsel %vm551_vm6, %v553_v36, %v549_v35 }
 0x9f2   :  { %v557_v40 = vmul.f32 %v554_v38, %v509_v14 }
 0xa4f   :  { %v560_v37 = vpop.permute.xlu1 %559 }
 0xa50   :  { %v562_v39 = vmul.f32 %v560_v37, %v554_v38 }
 0xa52   :  { %564 = vrot.lane.b32.xlu2 %v562_v39, %s1681_s3 }
 0xaac   :  { %v565_v41 = vpop.permute.xlu2 %564 }
 0xaad   :  { %v567_v43 = vadd.f32 %v565_v41, %v557_v40 }
 0xaaf   :  { %1431 = vtanh.f32 %v567_v43 }
 0xab5   :  { %v1432_v44 = vpop.eup %1431 }
 0xab6   :  { %570 = vrot.lane.b32.xlu0 %v1432_v44, %s1674_s9 }
 0xb28   :  { %v571_v45 = vpop.permute.xlu0 %570 }
 0xb29   :  { %v573_v46 = vmul.f32 %v571_v45, %v554_v38 }
 0xb2b   :  { %v574_v47 = vpack.c.bf16 %v573_v46, %v573_v46 }
 0xb2d   :  { %576 = vrot.lane.b32.xlu1 %v574_v47, %s1681_s3 }
 0xb9f   :  { %v577_v48 = vpop.permute.xlu1 %576 }
 0xba0   :  { %1334 = vmatmul.msk.bf16.vlgmr.msrb.gmra.mxu1 %vm287_vm5, %v577_v48 }
 0xc1d   :  { %v590_v50 = vpop.f32.mrf.mxu1 }
 0xc1e   :  { %v594_v51 = vadd.f32 %v590_v50, %v236_v49 }
 0xc20   :  { %1433 = vtanh.f32 %v594_v51  ;;  %v1335_v55 = vmul.f32 -1.442695, %v594_v51 }
 0xc22   :  { %1435 = vpow2.f32 %v1335_v55 }
 0xc25   :  { %v592_v53 = vpop.f32.mrf.mxu1 }
 0xc26   :  { %v1434_v54 = vpop.eup %1433 }
 0xc27   :  { %617 = vrot.lane.b32.xlu2 %v1434_v54, %s1674_s9 }
 0xc28   :  { %v1436_v56 = vpop.eup %1435 }
 0xc29   :  { %v598_v2 = vadd.f32 1.0, %v1436_v56 }
 0xc2b   :  { %1437 = vrcp.f32 %v598_v2  ;;  %v610_v61 = vand.u32 2147483648, %v598_v2  ;;  %vm604_vm8 = vweird.f32 %v598_v2  ;;  %v608_v42 = vand.u32 2147483647, %v598_v2 }
 0xc2d   :  { %v611_v63 = vor.u32 1.1754944e-38, %v610_v61  ;;  %vm609_vm10 = vcmp.eq.f32.partialorder %v608_v42, 8.507059e+37 }
 0xc31   :  { %v1438_v3 = vpop.eup %1437 }
 0xc32   :  { %v600_v57 = vmul.f32 %v1438_v3, %v598_v2  ;;  %vm605_vm7 = vweird.f32 %v1438_v3 }
 0xc33   :  { %vm606_vm9 = vmor %vm604_vm8, %vm605_vm7 }
 0xc34   :  { %v601_v58 = vsub.f32 1.0, %v600_v57 }
 0xc36   :  { %v602_v59 = vmul.f32 %v1438_v3, %v601_v58 }
 0xc38   :  { %v603_v60 = vadd.f32 %v1438_v3, %v602_v59 }
 0xc3a   :  { %v607_v62 = vsel %vm606_vm9, %v1438_v3, %v603_v60 }
 0xc3b   :  { %v612_v1 = vsel %vm609_vm10, %v611_v63, %v607_v62  ;;  %v1377_v63 = vld [vmem:[#allocation8 + $0x8] sm:$0xff] }
 0xc3c   :  { %v615_v5 = vmul.f32 %v612_v1, %v567_v43  ;;  %v272_v43 = vadd.f32 %v1764_v10, %v1806_v52  ;;  %776 = vmatpush.bf16.msra.mxu0 %v1377_v63 }
 0xc81   :  { %v618_v0 = vpop.permute.xlu2 %617 }
 0xc82   :  { %v620_v4 = vmul.f32 %v618_v0, %v612_v1  ;;  %v1379_v0 = vld [vmem:[#allocation10 + $0x8] sm:$0xff] }
 0xc83   :  { %801 = vmatpush.bf16.msra.mxu1 %v1379_v0  ;;  %859 = vmatpush.bf16.msra.mxu2 %v1379_v0 }
 0xc84   :  { %622 = vrot.lane.b32.xlu0 %v620_v4, %s1681_s3  ;;  %v1378_v4 = vld [vmem:[#allocation10] sm:$0xff]  ;;  %917 = vmatpush.bf16.msra.mxu3 %v1379_v0 }
 0xc87   :  { %802 = vmatpush.bf16.msra.mxu1 %v1378_v4  ;;  %860 = vmatpush.bf16.msra.mxu2 %v1378_v4 }
 0xc88   :  { %918 = vmatpush.bf16.msra.mxu3 %v1378_v4 }
 0xc8b   :  { %1033 = vmatpush.bf16.msrb.mxu1 %v1379_v0 }
 0xc8f   :  { %1034 = vmatpush.bf16.msrb.mxu1 %v1378_v4 }
 0xcf6   :  { %v623_v6 = vpop.permute.xlu0 %622 }
 0xcf7   :  { %v625_v7 = vadd.f32 %v623_v6, %v615_v5 }
 0xcf9   :  { %1439 = vtanh.f32 %v625_v7 }
 0xcff   :  { %v1440_v9 = vpop.eup %1439 }
 0xd00   :  { %628 = vrot.lane.b32.xlu1 %v1440_v9, %s1674_s9 }
 0xd72   :  { %v629_v11 = vpop.permute.xlu1 %628 }
 0xd73   :  { %v631_v12 = vmul.f32 %v629_v11, %v612_v1  ;;  %v1376_v1 = vld [vmem:[#allocation8] sm:$0xff]  ;;  %v1392_v11 = vld [vmem:[%s1942_s6] ss:$0 sm:$0xff]  ;;  %s1682_s6 = smov 96  }
 0xd74   :  { %777 = vmatpush.bf16.msra.mxu0 %v1376_v1 }
 0xd75   :  { %v632_v13 = vpack.c.bf16 %v631_v12, %v631_v12 }
 0xd77   :  { %634 = vrot.lane.b32.xlu2 %v632_v13, %s1681_s3 }
 0xd78   :  { %975 = vmatpush.bf16.msrb.mxu0 %v1379_v0 }
 0xd7c   :  { %976 = vmatpush.bf16.msrb.mxu0 %v1378_v4 }
 0xdd1   :  { %v635_v14 = vpop.permute.xlu2 %634 }
 0xdd2   :  { %1336 = vmatmul.msk.bf16.vlgmr.msrb.gmra.mxu2 %vm287_vm5, %v635_v14 }
 0xdd3   :  { %1091 = vmatpush.bf16.msrb.mxu2 %v1379_v0 }
 0xdd7   :  { %1092 = vmatpush.bf16.msrb.mxu2 %v1378_v4 }
 0xe55   :  { %v648_v16 = vpop.f32.mrf.mxu2 }
 0xe56   :  { %v652_v18 = vadd.f32 %v648_v16, %v254_v15 }
 0xe58   :  { %1441 = vtanh.f32 %v652_v18  ;;  %v1337_v21 = vmul.f32 -1.442695, %v652_v18 }
 0xe5a   :  { %1443 = vpow2.f32 %v1337_v21 }
 0xe5d   :  { %v650_v19 = vpop.f32.mrf.mxu2 }
 0xe5e   :  { %v1442_v20 = vpop.eup %1441 }
 0xe5f   :  { %675 = vrot.lane.b32.xlu0 %v1442_v20, %s1674_s9 }
 0xe60   :  { %v1444_v22 = vpop.eup %1443 }
 0xe61   :  { %v656_v23 = vadd.f32 1.0, %v1444_v22 }
 0xe63   :  { %1445 = vrcp.f32 %v656_v23  ;;  %v668_v29 = vand.u32 2147483648, %v656_v23  ;;  %vm662_vm12 = vweird.f32 %v656_v23  ;;  %v666_v17 = vand.u32 2147483647, %v656_v23 }
 0xe65   :  { %v669_v31 = vor.u32 1.1754944e-38, %v668_v29  ;;  %vm667_vm14 = vcmp.eq.f32.partialorder %v666_v17, 8.507059e+37 }
 0xe69   :  { %v1446_v24 = vpop.eup %1445 }
 0xe6a   :  { %v658_v25 = vmul.f32 %v1446_v24, %v656_v23  ;;  %vm663_vm11 = vweird.f32 %v1446_v24 }
 0xe6b   :  { %vm664_vm13 = vmor %vm662_vm12, %vm663_vm11 }
 0xe6c   :  { %v659_v26 = vsub.f32 1.0, %v658_v25 }
 0xe6e   :  { %v660_v27 = vmul.f32 %v1446_v24, %v659_v26 }
 0xe70   :  { %v661_v28 = vadd.f32 %v1446_v24, %v660_v27 }
 0xe72   :  { %v665_v30 = vsel %vm664_vm13, %v1446_v24, %v661_v28 }
 0xe73   :  { %v670_v33 = vsel %vm667_vm14, %v669_v31, %v665_v30 }
 0xe74   :  { %v673_v8 = vmul.f32 %v670_v33, %v625_v7 }
 0xed1   :  { %v676_v32 = vpop.permute.xlu0 %675 }
 0xed2   :  { %v678_v34 = vmul.f32 %v676_v32, %v670_v33 }
 0xed4   :  { %680 = vrot.lane.b32.xlu1 %v678_v34, %s1681_s3 }
 0xf46   :  { %v681_v35 = vpop.permute.xlu1 %680 }
 0xf47   :  { %v683_v36 = vadd.f32 %v681_v35, %v673_v8 }
 0xf49   :  { %1447 = vtanh.f32 %v683_v36 }
 0xf4f   :  { %v1448_v37 = vpop.eup %1447 }
 0xf50   :  { %686 = vrot.lane.b32.xlu2 %v1448_v37, %s1674_s9 }
 0xfaa   :  { %v687_v38 = vpop.permute.xlu2 %686 }
 0xfab   :  { %v689_v39 = vmul.f32 %v687_v38, %v670_v33 }
 0xfad   :  { %v690_v40 = vpack.c.bf16 %v689_v39, %v689_v39 }
 0xfaf   :  { %692 = vrot.lane.b32.xlu0 %v690_v40, %s1681_s3 }
0x1021   :  { %v693_v41 = vpop.permute.xlu0 %692 }
0x1022   :  { %1338 = vmatmul.msk.bf16.vlgmr.msrb.gmra.mxu3 %vm287_vm5, %v693_v41 }
0x1023   :  { %1149 = vmatpush.bf16.msrb.mxu3 %v1379_v0 }
0x1027   :  { %1150 = vmatpush.bf16.msrb.mxu3 %v1378_v4 }
0x10a5   :  { %v706_v44 = vpop.f32.mrf.mxu3 }
0x10a6   :  { %v710_v45 = vadd.f32 %v706_v44, %v272_v43 }
0x10a8   :  { %1449 = vtanh.f32 %v710_v45  ;;  %v1339_v48 = vmul.f32 -1.442695, %v710_v45 }
0x10aa   :  { %1451 = vpow2.f32 %v1339_v48 }
0x10ad   :  { %v708_v46 = vpop.f32.mrf.mxu3 }
0x10ae   :  { %v1450_v47 = vpop.eup %1449 }
0x10af   :  { %733 = vrot.lane.b32.xlu1 %v1450_v47, %s1674_s9 }
0x10b0   :  { %v1452_v49 = vpop.eup %1451 }
0x10b1   :  { %v714_v50 = vadd.f32 1.0, %v1452_v49 }
0x10b3   :  { %1453 = vrcp.f32 %v714_v50  ;;  %v726_v2 = vand.u32 2147483648, %v714_v50  ;;  %vm720_vm0 = vweird.f32 %v714_v50  ;;  %v724_v10 = vand.u32 2147483647, %v714_v50 }
0x10b5   :  { %v727_v3 = vor.u32 1.1754944e-38, %v726_v2  ;;  %vm725_vm2 = vcmp.eq.f32.partialorder %v724_v10, 8.507059e+37 }
0x10b9   :  { %v1454_v51 = vpop.eup %1453 }
0x10ba   :  { %v716_v53 = vmul.f32 %v1454_v51, %v714_v50  ;;  %vm721_vm15 = vweird.f32 %v1454_v51 }
0x10bb   :  { %vm722_vm1 = vmor %vm720_vm0, %vm721_vm15 }
0x10bc   :  { %v717_v54 = vsub.f32 1.0, %v716_v53 }
0x10be   :  { %v718_v55 = vmul.f32 %v1454_v51, %v717_v54 }
0x10c0   :  { %v719_v56 = vadd.f32 %v1454_v51, %v718_v55 }
0x10c2   :  { %v723_v52 = vsel %vm722_vm1, %v1454_v51, %v719_v56 }
0x10c3   :  { %v728_v58 = vsel %vm725_vm2, %v727_v3, %v723_v52 }
0x10c4   :  { %v731_v60 = vmul.f32 %v728_v58, %v683_v36 }
0x1121   :  { %v734_v57 = vpop.permute.xlu1 %733 }
0x1122   :  { %v736_v59 = vmul.f32 %v734_v57, %v728_v58 }
0x1124   :  { %738 = vrot.lane.b32.xlu2 %v736_v59, %s1681_s3 }
0x117e   :  { %v739_v61 = vpop.permute.xlu2 %738 }
0x117f   :  { %v1839_v42 = vadd.f32 %v739_v61, %v731_v60 }
0x1181   :  { %1455 = vtanh.f32 %v1839_v42 }
0x1187   :  { %v1456_v62 = vpop.eup %1455 }
0x1188   :  { %744 = vrot.lane.b32.xlu0 %v1456_v62, %s1674_s9 }
0x11fa   :  { %v745_v5 = vpop.permute.xlu0 %744 }
0x11fb   :  { %v747_v6 = vmul.f32 %v745_v5, %v728_v58 }
0x11fd   :  { %v748_v7 = vpack.c.bf16 %v747_v6, %v747_v6 }
0x11ff   :  { %753 = vrot.lane.b32.xlu1 %v748_v7, %s1681_s3 }
0x1271   :  { %v754_v9 = vpop.permute.xlu1 %753 }
0x1272   :  { %1348 = vmatmul.msk.bf16.vlgmr.msra.gmra.mxu0 %vm287_vm5, %v754_v9  ;;  %1357 = vmatmul.msk.bf16.vlgmr.msra.gmra.mxu1 %vm287_vm5, %v754_v9 }
0x1273   :  { %1207 = vmatpush.bf16.msra.mxu0 %v1379_v0 }
0x1277   :  { %1208 = vmatpush.bf16.msra.mxu0 %v1378_v4 }
0x12ef   :  { %v779_v12 = vpop.f32.mrf.mxu0  ;;  %v804_v13 = vpop.f32.mrf.mxu1 }
0x12f0   :  { %v1849_v14 = vadd.f32 %v1392_v11, %v779_v12 }
0x12f2   :  { %v808_v15 = vadd.f32 %v804_v13, %v1849_v14 }
0x12f4   :  { %1457 = vtanh.f32 %v808_v15  ;;  %v1358_v20 = vmul.f32 -1.442695, %v808_v15 }
0x12f6   :  { %1459 = vpow2.f32 %v1358_v20 }
0x12f7   :  { %v781_v16 = vpop.f32.mrf.mxu0  ;;  %v806_v18 = vpop.f32.mrf.mxu1 }
0x12fa   :  { %v1458_v19 = vpop.eup %1457 }
0x12fb   :  { %831 = vrot.lane.b32.xlu2 %v1458_v19, %s1674_s9 }
0x12fc   :  { %v1460_v21 = vpop.eup %1459 }
0x12fd   :  { %v812_v22 = vadd.f32 1.0, %v1460_v21 }
0x12ff   :  { %1461 = vrcp.f32 %v812_v22  ;;  %v824_v28 = vand.u32 2147483648, %v812_v22  ;;  %vm818_vm4 = vweird.f32 %v812_v22  ;;  %v822_v29 = vand.u32 2147483647, %v812_v22 }
0x1301   :  { %v825_v30 = vor.u32 1.1754944e-38, %v824_v28  ;;  %vm823_vm7 = vcmp.eq.f32.partialorder %v822_v29, 8.507059e+37 }
0x1305   :  { %v1462_v23 = vpop.eup %1461 }
0x1306   :  { %v814_v24 = vmul.f32 %v1462_v23, %v812_v22  ;;  %vm819_vm3 = vweird.f32 %v1462_v23 }
0x1307   :  { %vm820_vm6 = vmor %vm818_vm4, %vm819_vm3 }
0x1308   :  { %v815_v25 = vsub.f32 1.0, %v814_v24 }
0x130a   :  { %v816_v26 = vmul.f32 %v1462_v23, %v815_v25 }
0x130c   :  { %v817_v27 = vadd.f32 %v1462_v23, %v816_v26 }
0x130e   :  { %v821_v17 = vsel %vm820_vm6, %v1462_v23, %v817_v27 }
0x130f   :  { %v826_v32 = vsel %vm823_vm7, %v825_v30, %v821_v17 }
0x1310   :  { %v829_v34 = vmul.f32 %v826_v32, %v1839_v42 }
0x1355   :  { %v832_v31 = vpop.permute.xlu2 %831 }
0x1356   :  { %v834_v33 = vmul.f32 %v832_v31, %v826_v32 }
0x1358   :  { %836 = vrot.lane.b32.xlu0 %v834_v33, %s1681_s3 }
0x13ca   :  { %v837_v8 = vpop.permute.xlu0 %836 }
0x13cb   :  { %v839_v35 = vadd.f32 %v837_v8, %v829_v34 }
0x13cd   :  { %1463 = vtanh.f32 %v839_v35 }
0x13d3   :  { %v1464_v36 = vpop.eup %1463 }
0x13d4   :  { %842 = vrot.lane.b32.xlu1 %v1464_v36, %s1674_s9 }
0x1446   :  { %v843_v37 = vpop.permute.xlu1 %842 }
0x1447   :  { %v1856_v38 = vmul.f32 %v843_v37, %v826_v32 }
0x1449   :  { %v846_v39 = vpack.c.bf16 %v1856_v38, %v1856_v38 }
0x144b   :  { %848 = vrot.lane.b32.xlu2 %v846_v39, %s1681_s3 }
0x14a5   :  { %v849_v40 = vpop.permute.xlu2 %848 }
0x14a6   :  { %1359 = vmatmul.msk.bf16.vlgmr.msra.gmra.mxu2 %vm287_vm5, %v849_v40 }
0x1529   :  { %v862_v41 = vpop.f32.mrf.mxu2 }
0x152a   :  { %v866_v43 = vadd.f32 %v862_v41, %v1849_v14 }
0x152c   :  { %1465 = vtanh.f32 %v866_v43  ;;  %v1360_v46 = vmul.f32 -1.442695, %v866_v43 }
0x152e   :  { %1467 = vpow2.f32 %v1360_v46 }
0x1531   :  { %v864_v44 = vpop.f32.mrf.mxu2 }
0x1532   :  { %v1466_v45 = vpop.eup %1465 }
0x1533   :  { %889 = vrot.lane.b32.xlu0 %v1466_v45, %s1674_s9 }
0x1534   :  { %v1468_v47 = vpop.eup %1467 }
0x1535   :  { %v870_v48 = vadd.f32 1.0, %v1468_v47 }
0x1537   :  { %1469 = vrcp.f32 %v870_v48  ;;  %v882_v55 = vand.u32 2147483648, %v870_v48  ;;  %vm876_vm9 = vweird.f32 %v870_v48  ;;  %v880_v56 = vand.u32 2147483647, %v870_v48 }
0x1539   :  { %v883_v10 = vor.u32 1.1754944e-38, %v882_v55  ;;  %vm881_vm11 = vcmp.eq.f32.partialorder %v880_v56, 8.507059e+37 }
0x153d   :  { %v1470_v49 = vpop.eup %1469 }
0x153e   :  { %v872_v50 = vmul.f32 %v1470_v49, %v870_v48  ;;  %vm877_vm8 = vweird.f32 %v1470_v49 }
0x153f   :  { %vm878_vm10 = vmor %vm876_vm9, %vm877_vm8 }
0x1540   :  { %v873_v51 = vsub.f32 1.0, %v872_v50 }
0x1542   :  { %v874_v53 = vmul.f32 %v1470_v49, %v873_v51 }
0x1544   :  { %v875_v54 = vadd.f32 %v1470_v49, %v874_v53 }
0x1546   :  { %v879_v2 = vsel %vm878_vm10, %v1470_v49, %v875_v54 }
0x1547   :  { %v884_v3 = vsel %vm881_vm11, %v883_v10, %v879_v2 }
0x1548   :  { %v887_v58 = vmul.f32 %v884_v3, %v839_v35 }
0x15a5   :  { %v890_v52 = vpop.permute.xlu0 %889 }
0x15a6   :  { %v892_v57 = vmul.f32 %v890_v52, %v884_v3 }
0x15a8   :  { %894 = vrot.lane.b32.xlu1 %v892_v57, %s1681_s3 }
0x161a   :  { %v895_v59 = vpop.permute.xlu1 %894 }
0x161b   :  { %v897_v60 = vadd.f32 %v895_v59, %v887_v58 }
0x161d   :  { %1471 = vtanh.f32 %v897_v60 }
0x1623   :  { %v1472_v61 = vpop.eup %1471 }
0x1624   :  { %900 = vrot.lane.b32.xlu2 %v1472_v61, %s1674_s9 }
0x167e   :  { %v901_v42 = vpop.permute.xlu2 %900 }
0x167f   :  { %v1866_v62 = vmul.f32 %v901_v42, %v884_v3 }
0x1681   :  { %v904_v63 = vpack.c.bf16 %v1866_v62, %v1866_v62 }
0x1683   :  { %906 = vrot.lane.b32.xlu0 %v904_v63, %s1681_s3 }
0x16f5   :  { %v907_v0 = vpop.permute.xlu0 %906 }
0x16f6   :  { %1361 = vmatmul.msk.bf16.vlgmr.msra.gmra.mxu3 %vm287_vm5, %v907_v0 }
0x1779   :  { %v920_v1 = vpop.f32.mrf.mxu3 }
0x177a   :  { %v924_v4 = vadd.f32 %v920_v1, %v1849_v14 }
0x177c   :  { %1473 = vtanh.f32 %v924_v4  ;;  %v1362_v7 = vmul.f32 -1.442695, %v924_v4 }
0x177e   :  { %1475 = vpow2.f32 %v1362_v7 }
0x1781   :  { %v922_v5 = vpop.f32.mrf.mxu3 }
0x1782   :  { %v1474_v6 = vpop.eup %1473 }
0x1783   :  { %947 = vrot.lane.b32.xlu1 %v1474_v6, %s1674_s9 }
0x1784   :  { %v1476_v9 = vpop.eup %1475 }
0x1785   :  { %v928_v11 = vadd.f32 1.0, %v1476_v9 }
0x1787   :  { %1477 = vrcp.f32 %v928_v11  ;;  %v940_v19 = vand.u32 2147483648, %v928_v11  ;;  %vm934_vm13 = vweird.f32 %v928_v11  ;;  %v938_v20 = vand.u32 2147483647, %v928_v11 }
0x1789   :  { %v941_v22 = vor.u32 1.1754944e-38, %v940_v19  ;;  %vm939_vm15 = vcmp.eq.f32.partialorder %v938_v20, 8.507059e+37 }
0x178d   :  { %v1478_v12 = vpop.eup %1477 }
0x178e   :  { %v930_v13 = vmul.f32 %v1478_v12, %v928_v11  ;;  %vm935_vm12 = vweird.f32 %v1478_v12 }
0x178f   :  { %vm936_vm14 = vmor %vm934_vm13, %vm935_vm12 }
0x1790   :  { %v931_v15 = vsub.f32 1.0, %v930_v13 }
0x1792   :  { %v932_v16 = vmul.f32 %v1478_v12, %v931_v15 }
0x1794   :  { %v933_v18 = vadd.f32 %v1478_v12, %v932_v16 }
0x1796   :  { %v937_v21 = vsel %vm936_vm14, %v1478_v12, %v933_v18 }
0x1797   :  { %v942_v24 = vsel %vm939_vm15, %v941_v22, %v937_v21 }
0x1798   :  { %v945_v26 = vmul.f32 %v942_v24, %v897_v60 }
0x17f5   :  { %v948_v23 = vpop.permute.xlu1 %947 }
0x17f6   :  { %v950_v25 = vmul.f32 %v948_v23, %v942_v24 }
0x17f8   :  { %952 = vrot.lane.b32.xlu2 %v950_v25, %s1681_s3 }
0x1852   :  { %v953_v27 = vpop.permute.xlu2 %952 }
0x1853   :  { %v955_v28 = vadd.f32 %v953_v27, %v945_v26 }
0x1855   :  { %1479 = vtanh.f32 %v955_v28 }
0x185b   :  { %v1480_v29 = vpop.eup %1479 }
0x185c   :  { %958 = vrot.lane.b32.xlu0 %v1480_v29, %s1674_s9 }
0x18ce   :  { %v959_v17 = vpop.permute.xlu0 %958 }
0x18cf   :  { %v1876_v30 = vmul.f32 %v959_v17, %v942_v24 }
0x18d1   :  { %v962_v31 = vpack.c.bf16 %v1876_v30, %v1876_v30 }
0x18d3   :  { %964 = vrot.lane.b32.xlu1 %v962_v31, %s1681_s3 }
0x1945   :  { %v965_v32 = vpop.permute.xlu1 %964 }
0x1946   :  { %1363 = vmatmul.msk.bf16.vlgmr.msrb.gmra.mxu0 %vm287_vm5, %v965_v32 }
0x19c3   :  { %v978_v33 = vpop.f32.mrf.mxu0 }
0x19c4   :  { %v982_v34 = vadd.f32 %v978_v33, %v1849_v14 }
0x19c6   :  { %1481 = vtanh.f32 %v982_v34  ;;  %v1364_v36 = vmul.f32 -1.442695, %v982_v34 }
0x19c8   :  { %1483 = vpow2.f32 %v1364_v36 }
0x19cb   :  { %v980_v8 = vpop.f32.mrf.mxu0 }
0x19cc   :  { %v1482_v35 = vpop.eup %1481 }
0x19cd   :  { %1005 = vrot.lane.b32.xlu2 %v1482_v35, %s1674_s9 }
0x19ce   :  { %v1484_v37 = vpop.eup %1483 }
0x19cf   :  { %v986_v39 = vadd.f32 1.0, %v1484_v37 }
0x19d1   :  { %1485 = vrcp.f32 %v986_v39  ;;  %v998_v46 = vand.u32 2147483648, %v986_v39  ;;  %vm992_vm1 = vweird.f32 %v986_v39  ;;  %v996_v47 = vand.u32 2147483647, %v986_v39 }
0x19d3   :  { %v999_v49 = vor.u32 1.1754944e-38, %v998_v46  ;;  %vm997_vm3 = vcmp.eq.f32.partialorder %v996_v47, 8.507059e+37 }
0x19d7   :  { %v1486_v40 = vpop.eup %1485 }
0x19d8   :  { %v988_v41 = vmul.f32 %v1486_v40, %v986_v39  ;;  %vm993_vm0 = vweird.f32 %v1486_v40 }
0x19d9   :  { %vm994_vm2 = vmor %vm992_vm1, %vm993_vm0 }
0x19da   :  { %v989_v43 = vsub.f32 1.0, %v988_v41 }
0x19dc   :  { %v990_v44 = vmul.f32 %v1486_v40, %v989_v43 }
0x19de   :  { %v991_v45 = vadd.f32 %v1486_v40, %v990_v44 }
0x19e0   :  { %v995_v48 = vsel %vm994_vm2, %v1486_v40, %v991_v45 }
0x19e1   :  { %v1000_v51 = vsel %vm997_vm3, %v999_v49, %v995_v48 }
0x19e2   :  { %v1003_v54 = vmul.f32 %v1000_v51, %v955_v28 }
0x1a27   :  { %v1006_v50 = vpop.permute.xlu2 %1005 }
0x1a28   :  { %v1008_v53 = vmul.f32 %v1006_v50, %v1000_v51 }
0x1a2a   :  { %1010 = vrot.lane.b32.xlu0 %v1008_v53, %s1681_s3 }
0x1a9c   :  { %v1011_v55 = vpop.permute.xlu0 %1010 }
0x1a9d   :  { %v1013_v56 = vadd.f32 %v1011_v55, %v1003_v54 }
0x1a9f   :  { %1487 = vtanh.f32 %v1013_v56 }
0x1aa5   :  { %v1488_v2 = vpop.eup %1487 }
0x1aa6   :  { %1016 = vrot.lane.b32.xlu1 %v1488_v2, %s1674_s9 }
0x1b18   :  { %v1017_v10 = vpop.permute.xlu1 %1016 }
0x1b19   :  { %v1886_v52 = vmul.f32 %v1017_v10, %v1000_v51 }
0x1b1b   :  { %v1020_v3 = vpack.c.bf16 %v1886_v52, %v1886_v52 }
0x1b1d   :  { %1022 = vrot.lane.b32.xlu2 %v1020_v3, %s1681_s3 }
0x1b77   :  { %v1023_v57 = vpop.permute.xlu2 %1022 }
0x1b78   :  { %1365 = vmatmul.msk.bf16.vlgmr.msrb.gmra.mxu1 %vm287_vm5, %v1023_v57 }
0x1bf5   :  { %v1036_v58 = vpop.f32.mrf.mxu1 }
0x1bf6   :  { %v1040_v59 = vadd.f32 %v1036_v58, %v1849_v14 }
0x1bf8   :  { %1489 = vtanh.f32 %v1040_v59  ;;  %v1366_v42 = vmul.f32 -1.442695, %v1040_v59 }
0x1bfa   :  { %1491 = vpow2.f32 %v1366_v42 }
0x1bfd   :  { %v1038_v60 = vpop.f32.mrf.mxu1 }
0x1bfe   :  { %v1490_v61 = vpop.eup %1489 }
0x1bff   :  { %1063 = vrot.lane.b32.xlu0 %v1490_v61, %s1674_s9 }
0x1c00   :  { %v1492_v63 = vpop.eup %1491 }
0x1c01   :  { %v1044_v0 = vadd.f32 1.0, %v1492_v63 }
0x1c03   :  { %1493 = vrcp.f32 %v1044_v0  ;;  %v1056_v9 = vand.u32 2147483648, %v1044_v0  ;;  %vm1050_vm6 = vweird.f32 %v1044_v0  ;;  %v1054_v11 = vand.u32 2147483647, %v1044_v0 }
0x1c05   :  { %v1057_v13 = vor.u32 1.1754944e-38, %v1056_v9  ;;  %vm1055_vm8 = vcmp.eq.f32.partialorder %v1054_v11, 8.507059e+37 }
0x1c09   :  { %v1494_v1 = vpop.eup %1493 }
0x1c0a   :  { %v1046_v4 = vmul.f32 %v1494_v1, %v1044_v0  ;;  %vm1051_vm4 = vweird.f32 %v1494_v1 }
0x1c0b   :  { %vm1052_vm7 = vmor %vm1050_vm6, %vm1051_vm4  ;;  %vm1277_vm6 = vcmask 523264  }
0x1c0c   :  { %v1047_v5 = vsub.f32 1.0, %v1046_v4 }
0x1c0e   :  { %v1048_v6 = vmul.f32 %v1494_v1, %v1047_v5 }
0x1c10   :  { %v1049_v7 = vadd.f32 %v1494_v1, %v1048_v6 }
0x1c12   :  { %v1053_v12 = vsel %vm1052_vm7, %v1494_v1, %v1049_v7  ;;  %vm1279_vm7 = vcmask 785408  }
0x1c13   :  { %v1058_v16 = vsel %vm1055_vm8, %v1057_v13, %v1053_v12 }
0x1c14   :  { %v1061_v19 = vmul.f32 %v1058_v16, %v1013_v56 }
0x1c71   :  { %v1064_v15 = vpop.permute.xlu0 %1063 }
0x1c72   :  { %v1066_v18 = vmul.f32 %v1064_v15, %v1058_v16 }
0x1c74   :  { %1068 = vrot.lane.b32.xlu1 %v1066_v18, %s1681_s3 }
0x1ce6   :  { %v1069_v20 = vpop.permute.xlu1 %1068 }
0x1ce7   :  { %v1071_v21 = vadd.f32 %v1069_v20, %v1061_v19 }
0x1ce9   :  { %1495 = vtanh.f32 %v1071_v21 }
0x1cef   :  { %v1496_v22 = vpop.eup %1495 }
0x1cf0   :  { %1074 = vrot.lane.b32.xlu2 %v1496_v22, %s1674_s9 }
0x1d4a   :  { %v1075_v23 = vpop.permute.xlu2 %1074 }
0x1d4b   :  { %v1896_v24 = vmul.f32 %v1075_v23, %v1058_v16 }
0x1d4d   :  { %v1078_v25 = vpack.c.bf16 %v1896_v24, %v1896_v24 }
0x1d4f   :  { %1080 = vrot.lane.b32.xlu0 %v1078_v25, %s1681_s3 }
0x1dc1   :  { %v1081_v26 = vpop.permute.xlu0 %1080 }
0x1dc2   :  { %1367 = vmatmul.msk.bf16.vlgmr.msrb.gmra.mxu2 %vm287_vm5, %v1081_v26 }
0x1e45   :  { %v1094_v27 = vpop.f32.mrf.mxu2 }
0x1e46   :  { %v1098_v28 = vadd.f32 %v1094_v27, %v1849_v14 }
0x1e48   :  { %1497 = vtanh.f32 %v1098_v28  ;;  %v1368_v31 = vmul.f32 -1.442695, %v1098_v28 }
0x1e4a   :  { %1499 = vpow2.f32 %v1368_v31 }
0x1e4d   :  { %v1096_v29 = vpop.f32.mrf.mxu2 }
0x1e4e   :  { %v1498_v17 = vpop.eup %1497 }
0x1e4f   :  { %1121 = vrot.lane.b32.xlu1 %v1498_v17, %s1674_s9 }
0x1e50   :  { %v1500_v32 = vpop.eup %1499 }
0x1e51   :  { %v1102_v33 = vadd.f32 1.0, %v1500_v32 }
0x1e53   :  { %1501 = vrcp.f32 %v1102_v33  ;;  %v1114_v39 = vand.u32 2147483648, %v1102_v33  ;;  %vm1108_vm10 = vweird.f32 %v1102_v33  ;;  %v1112_v40 = vand.u32 2147483647, %v1102_v33 }
0x1e55   :  { %v1115_v43 = vor.u32 1.1754944e-38, %v1114_v39  ;;  %vm1113_vm12 = vcmp.eq.f32.partialorder %v1112_v40, 8.507059e+37 }
0x1e59   :  { %v1502_v34 = vpop.eup %1501 }
0x1e5a   :  { %v1104_v8 = vmul.f32 %v1502_v34, %v1102_v33  ;;  %vm1109_vm9 = vweird.f32 %v1502_v34 }
0x1e5b   :  { %vm1110_vm11 = vmor %vm1108_vm10, %vm1109_vm9 }
0x1e5c   :  { %v1105_v35 = vsub.f32 1.0, %v1104_v8 }
0x1e5e   :  { %v1106_v36 = vmul.f32 %v1502_v34, %v1105_v35 }
0x1e60   :  { %v1107_v37 = vadd.f32 %v1502_v34, %v1106_v36 }
0x1e62   :  { %v1111_v41 = vsel %vm1110_vm11, %v1502_v34, %v1107_v37 }
0x1e63   :  { %v1116_v45 = vsel %vm1113_vm12, %v1115_v43, %v1111_v41 }
0x1e64   :  { %v1119_v47 = vmul.f32 %v1116_v45, %v1071_v21 }
0x1ec1   :  { %v1122_v44 = vpop.permute.xlu1 %1121 }
0x1ec2   :  { %v1124_v46 = vmul.f32 %v1122_v44, %v1116_v45 }
0x1ec4   :  { %1126 = vrot.lane.b32.xlu2 %v1124_v46, %s1681_s3 }
0x1f1e   :  { %v1127_v48 = vpop.permute.xlu2 %1126 }
0x1f1f   :  { %v1129_v49 = vadd.f32 %v1127_v48, %v1119_v47 }
0x1f21   :  { %1503 = vtanh.f32 %v1129_v49 }
0x1f27   :  { %v1504_v50 = vpop.eup %1503 }
0x1f28   :  { %1132 = vrot.lane.b32.xlu0 %v1504_v50, %s1674_s9 }
0x1f9a   :  { %v1133_v51 = vpop.permute.xlu0 %1132 }
0x1f9b   :  { %v1135_v53 = vmul.f32 %v1133_v51, %v1116_v45 }
0x1f9d   :  { %v1136_v54 = vpack.c.bf16 %v1135_v53, %v1135_v53 }
0x1f9f   :  { %1138 = vrot.lane.b32.xlu1 %v1136_v54, %s1681_s3 }
0x2011   :  { %v1139_v55 = vpop.permute.xlu1 %1138 }
0x2012   :  { %1369 = vmatmul.msk.bf16.vlgmr.msrb.gmra.mxu3 %vm287_vm5, %v1139_v55 }
0x2095   :  { %v1152_v56 = vpop.f32.mrf.mxu3 }
0x2096   :  { %v1156_v2 = vadd.f32 %v1152_v56, %v1849_v14 }
0x2098   :  { %1505 = vtanh.f32 %v1156_v2  ;;  %v1370_v57 = vmul.f32 -1.442695, %v1156_v2 }
0x209a   :  { %1507 = vpow2.f32 %v1370_v57 }
0x209d   :  { %v1154_v10 = vpop.f32.mrf.mxu3 }
0x209e   :  { %v1506_v3 = vpop.eup %1505 }
0x209f   :  { %1179 = vrot.lane.b32.xlu2 %v1506_v3, %s1674_s9 }
0x20a0   :  { %v1508_v58 = vpop.eup %1507 }
0x20a1   :  { %v1160_v59 = vadd.f32 1.0, %v1508_v58 }
0x20a3   :  { %1509 = vrcp.f32 %v1160_v59  ;;  %v1172_v1 = vand.u32 2147483648, %v1160_v59  ;;  %vm1166_vm14 = vweird.f32 %v1160_v59  ;;  %v1170_v4 = vand.u32 2147483647, %v1160_v59 }
0x20a5   :  { %v1173_v6 = vor.u32 1.1754944e-38, %v1172_v1  ;;  %vm1171_vm0 = vcmp.eq.f32.partialorder %v1170_v4, 8.507059e+37 }
0x20a9   :  { %v1510_v60 = vpop.eup %1509 }
0x20aa   :  { %v1162_v61 = vmul.f32 %v1510_v60, %v1160_v59  ;;  %vm1167_vm13 = vweird.f32 %v1510_v60 }
0x20ab   :  { %vm1168_vm15 = vmor %vm1166_vm14, %vm1167_vm13 }
0x20ac   :  { %v1163_v42 = vsub.f32 1.0, %v1162_v61 }
0x20ae   :  { %v1164_v63 = vmul.f32 %v1510_v60, %v1163_v42 }
0x20b0   :  { %v1165_v0 = vadd.f32 %v1510_v60, %v1164_v63 }
0x20b2   :  { %v1169_v5 = vsel %vm1168_vm15, %v1510_v60, %v1165_v0 }
0x20b3   :  { %v1174_v9 = vsel %vm1171_vm0, %v1173_v6, %v1169_v5 }
0x20b4   :  { %v1177_v12 = vmul.f32 %v1174_v9, %v1129_v49 }
0x20f9   :  { %v1180_v7 = vpop.permute.xlu2 %1179 }
0x20fa   :  { %v1182_v11 = vmul.f32 %v1180_v7, %v1174_v9 }
0x20fc   :  { %1184 = vrot.lane.b32.xlu0 %v1182_v11, %s1681_s3 }
0x216e   :  { %v1185_v13 = vpop.permute.xlu0 %1184 }
0x216f   :  { %v1187_v15 = vadd.f32 %v1185_v13, %v1177_v12 }
0x2171   :  { %1511 = vtanh.f32 %v1187_v15 }
0x2177   :  { %v1512_v16 = vpop.eup %1511 }
0x2178   :  { %1190 = vrot.lane.b32.xlu1 %v1512_v16, %s1674_s9 }
0x21ea   :  { %v1191_v18 = vpop.permute.xlu1 %1190 }
0x21eb   :  { %v1193_v19 = vmul.f32 %v1191_v18, %v1174_v9 }
0x21ed   :  { %v1194_v20 = vpack.c.bf16 %v1193_v19, %v1193_v19 }
0x21ef   :  { %1196 = vrot.lane.b32.xlu2 %v1194_v20, %s1681_s3 }
0x21f7   :  { %1265 = vrot.lane.b32.xlu2 %v1896_v24, %s1681_s3 }
0x2249   :  { %v1197_v21 = vpop.permute.xlu2 %1196 }
0x224a   :  { %1371 = vmatmul.msk.bf16.vlgmr.msra.gmra.mxu0 %vm287_vm5, %v1197_v21 }
0x22c7   :  { %v1210_v22 = vpop.f32.mrf.mxu0 }
0x22c8   :  { %v1214_v23 = vadd.f32 %v1210_v22, %v1849_v14 }
0x22ca   :  { %1513 = vtanh.f32 %v1214_v23  ;;  %v1372_v27 = vmul.f32 -1.442695, %v1214_v23 }
0x22cc   :  { %1515 = vpow2.f32 %v1372_v27 }
0x22cf   :  { %v1212_v25 = vpop.f32.mrf.mxu0 }
0x22d0   :  { %v1514_v26 = vpop.eup %1513 }
0x22d1   :  { %1237 = vrot.lane.b32.xlu0 %v1514_v26, %s1674_s9 }
0x22d2   :  { %v1516_v28 = vpop.eup %1515 }
0x22d3   :  { %v1218_v24 = vadd.f32 1.0, %v1516_v28 }
0x22d5   :  { %1517 = vrcp.f32 %v1218_v24  ;;  %v1230_v33 = vand.u32 2147483648, %v1218_v24  ;;  %vm1224_vm2 = vweird.f32 %v1218_v24  ;;  %v1228_v34 = vand.u32 2147483647, %v1218_v24 }
0x22d7   :  { %v1231_v35 = vor.u32 1.1754944e-38, %v1230_v33  ;;  %vm1229_vm4 = vcmp.eq.f32.partialorder %v1228_v34, 8.507059e+37 }
0x22d9   :  { %1253 = vrot.lane.b32.xlu0 %v1856_v38, %s1681_s3 }
0x22db   :  { %v1518_v29 = vpop.eup %1517 }
0x22dc   :  { %v1220_v17 = vmul.f32 %v1518_v29, %v1218_v24  ;;  %vm1225_vm1 = vweird.f32 %v1518_v29 }
0x22dd   :  { %vm1226_vm3 = vmor %vm1224_vm2, %vm1225_vm1 }
0x22de   :  { %v1221_v31 = vsub.f32 1.0, %v1220_v17 }
0x22e0   :  { %v1222_v32 = vmul.f32 %v1518_v29, %v1221_v31 }
0x22e1   :  { %1269 = vrot.lane.b32.xlu0 %v1135_v53, %s1674_s9 }
0x22e2   :  { %v1223_v14 = vadd.f32 %v1518_v29, %v1222_v32 }
0x22e4   :  { %v1227_v8 = vsel %vm1226_vm3, %v1518_v29, %v1223_v14 }
0x22e5   :  { %v1232_v36 = vsel %vm1229_vm4, %v1231_v35, %v1227_v8 }
0x22e6   :  { %v1235_v39 = vmul.f32 %v1232_v36, %v1187_v15 }
0x2343   :  { %v1238_v38 = vpop.permute.xlu0 %1237 }
0x2344   :  { %v1240_v37 = vmul.f32 %v1238_v38, %v1232_v36 }
0x2346   :  { %1242 = vrot.lane.b32.xlu1 %v1240_v37, %s1681_s3 }
0x234b   :  { %v1254_v45 = vpop.permute.xlu0 %1253 }
0x234e   :  { %1257 = vrot.lane.b32.xlu1 %v1866_v62, %s1674_s9 }
0x2353   :  { %v1270_v50 = vpop.permute.xlu0 %1269 }
0x2356   :  { %1261 = vrot.lane.b32.xlu1 %v1876_v30, %s1682_s6  ;;  %v1266_v30 = vpop.permute.xlu2 %1265 }
0x2357   :  { %v1281_v51 = vsel %vm287_vm5, %v1266_v30, %v1270_v50 }
0x23b8   :  { %v1243_v40 = vpop.permute.xlu1 %1242 }
0x23b9   :  { %v1245_v41 = vadd.f32 %v1243_v40, %v1235_v39 }
0x23bb   :  { %1519 = vtanh.f32 %v1245_v41 }
0x23c0   :  { %v1258_v43 = vpop.permute.xlu1 %1257 }
0x23c1   :  { %v1520_v44 = vpop.eup %1519  ;;  %v1276_v46 = vsel %vm287_vm5, %v1254_v45, %v1258_v43 }
0x23c2   :  { %1248 = vrot.lane.b32.xlu2 %v1520_v44, %s1674_s9 }
0x23c8   :  { %v1262_v47 = vpop.permute.xlu1 %1261 }
0x23c9   :  { %v1278_v48 = vsel %vm1277_vm6, %v1276_v46, %v1262_v47 }
0x23ca   :  { %v1280_v62 = vsel %vm1279_vm7, %v1278_v48, %v1886_v52  ;;  %1273 = vrot.lane.b32.xlu2 %v1193_v19, %s1682_s6 }
0x23cb   :  { %1284 = vst [vmem:[#allocation11] sm:$0xff] %v1280_v62 }
0x241c   :  { %v1249_v49 = vpop.permute.xlu2 %1248 }
0x241d   :  { %v1251_v53 = vmul.f32 %v1249_v49, %v1232_v36 }
0x2424   :  { %v1274_v54 = vpop.permute.xlu2 %1273 }
0x2425   :  { %v1282_v55 = vsel %vm1277_vm6, %v1281_v51, %v1274_v54 }
0x2426   :  { %v1283_v52 = vsel %vm1279_vm7, %v1282_v55, %v1251_v53 }
0x2427   :  { %1285 = vst [vmem:[#allocation11 + $0x8] sm:$0xff] %v1283_v52 }
0x2428   :  { %1296 = dma.vmem_to_hbm [thread:$0]  %s1292_s28, 256, %s1294_s8, [#allocation4]  }
0x2429   :  { %1671 = dma.done.wait [#allocation4], 256  }
0x242a   :  { %1672 = vsyncadd [#allocation4], 4294967040 }
0x242b   :  { %1301 = vsyncpa [#allocation3], 1 }
0x242c   :  { %1302 = vsyncpa [#allocation6], 1 }
0x242d   :  { %1303 = vsyncpa [#allocation9], 1 }
0x242e   :  { %1304 = vsyncpa [#allocation4], 1 }

</bundles_post_ra>
